<compile_context>
chip_gen: v7x
topology: tpu7x:2x2x1
jax: 0.10.0
libtpu: 0.0.40
codegen_flags: <defaults>
</compile_context>

<pallas_src>
import functools

import jax
import jax.numpy as jnp
from jax.experimental import pallas as pl
from jax.experimental.pallas import tpu as pltpu


# -----------------------------------------------------------------------------
# Pallas kernel
# -----------------------------------------------------------------------------
def rnn_module_kernel(
    x_ref,      # (T, BKt, N)  input tile (fp32)
    gamma_ref,  # (1, N)       GroupNorm weight
    beta_ref,   # (1, N)       GroupNorm bias
    pool_ref,   # (N, N)       group pooling matrix P = (gmat @ gmat.T)/gs
    wih_ref,    # (N, 8H)      fused input proj, cols [i_f,i_b,f_f,f_b,o_f,o_b,g_f,g_b]
    whh_ref,    # (2H, 8H)     block-diag fused recurrent weight, rows [h_f | h_b]
    b_ref,      # (1, 8H)      fused bias (b_ih + b_hh, both directions)
    wfc_ref,    # (2H, N)      fc weight^T (fwd rows 0:H, bwd rows H:2H)
    bfc_ref,    # (1, N)       fc bias
    y_ref,      # (T, BKt, N)  output tile
    gx_ref,     # scratch (T, BKt, 8H)  pre-merged input projection
    h2_ref,     # scratch (T, BKt, 2H)  hidden states [h_fwd | h_bwd]
):
    T, BKt, N = x_ref.shape
    H8 = whh_ref.shape[1]
    H = H8 // 8
    inv_T = 1.0 / float(T)

    # ---------------- GroupNorm (two-pass stats, single pooling dot) ---------
    x = x_ref[...]                                        # (T, BKt, N)
    pool = pool_ref[...]                                  # (N, N), 1/gs in-group
    mean_c = jnp.dot(jnp.sum(x, axis=0), pool,
                     preferred_element_type=jnp.float32) * inv_T        # (BKt, N)
    xc = x - mean_c[None]
    var_c = jnp.dot(jnp.sum(xc * xc, axis=0), pool,
                    preferred_element_type=jnp.float32) * inv_T         # (BKt, N)
    rstd_c = jax.lax.rsqrt(var_c + 1e-5)
    xn = xc * rstd_c[None] * gamma_ref[...][None] + beta_ref[...][None]

    # ---------------- fused input projection (both directions, one dot) ------
    gx_ref[...] = (
        jnp.dot(xn.reshape(T * BKt, N), wih_ref[...],
                preferred_element_type=jnp.float32) + b_ref[...]
    ).reshape(T, BKt, H8)

    # Pre-merge forward/backward time indexing IN PLACE (pairwise slice swaps,
    # static indices, outside the serial chain): after this, step s only needs
    # gx_ref[s] for both directions.
    lane8 = jax.lax.broadcasted_iota(jnp.int32, (BKt, H8), 1)
    fwd8 = (lane8 % (2 * H)) < H            # columns belonging to the fwd dir
    for t in range(T // 2):
        tb = T - 1 - t
        a = gx_ref[t]
        bb = gx_ref[tb]
        gx_ref[t] = jnp.where(fwd8, a, bb)
        gx_ref[tb] = jnp.where(fwd8, bb, a)

    whh = whh_ref[...]                      # loop-invariant, hoisted
    # TODO(synk): hold whh in MXU weight registers across steps
    # (pltpu.matmul_push_rhs / matmul_acc_lhs / matmul_pop) at production sizes.

    h0 = jnp.zeros((BKt, 2 * H), jnp.float32)   # [h_fwd | h_bwd]
    c0 = jnp.zeros((BKt, 2 * H), jnp.float32)   # [c_fwd | c_bwd]

    # ---------------- fused bidirectional recurrence (one loop) --------------
    def step(s, carry):
        h, c = carry
        gates = gx_ref[s] + jnp.dot(h, whh, preferred_element_type=jnp.float32)
        sig = jax.nn.sigmoid(gates[:, 0:6 * H])           # i|f|o, one wide slice
        i_g = sig[:, 0:2 * H]
        f_g = sig[:, 2 * H:4 * H]
        o_g = sig[:, 4 * H:6 * H]
        g_g = jnp.tanh(gates[:, 6 * H:8 * H])             # g, one wide slice
        c = f_g * c + i_g * g_g
        h = o_g * jnp.tanh(c)
        h2_ref[s] = h                                     # single store per step
        return (h, c)

    # full unroll only for small static T (vreg pressure / code size otherwise)
    unroll = True if T <= 16 else 8
    jax.lax.fori_loop(0, T, step, (h0, c0), unroll=unroll)

    # Re-align the backward half in time (pairwise slice swaps, outside the
    # serial chain) so the fc is ONE dot against the fused (2H, N) weight.
    lane2 = jax.lax.broadcasted_iota(jnp.int32, (BKt, 2 * H), 1)
    fwd2 = lane2 < H
    for t in range(T // 2):
        tb = T - 1 - t
        a = h2_ref[t]
        bb = h2_ref[tb]
        h2_ref[t] = jnp.where(fwd2, a, bb)
        h2_ref[tb] = jnp.where(fwd2, bb, a)

    # ---------------- fc (single fused dot) + residual ------------------------
    out = (
        jnp.dot(h2_ref[...].reshape(T * BKt, 2 * H), wfc_ref[...],
                preferred_element_type=jnp.float32) + bfc_ref[...]
    ).reshape(T, BKt, N)
    # re-read x from its ref for the residual (keeps vreg live ranges short)
    y_ref[...] = out + x_ref[...]


# -----------------------------------------------------------------------------
# Parameter preparation (PyTorch-natural params -> kernel layout)
# -----------------------------------------------------------------------------
def prepare_kernel_params(p, group_num):
    N = p["gn_w"].shape[0]
    H = p["W_hh_f"].shape[1]
    gs = N // group_num

    def split_ifgo(wT):
        # (X, 4H) in torch gate order i, f, g, o  ->  (i, f, o, g)
        return wT[:, 0:H], wT[:, H:2 * H], wT[:, 3 * H:4 * H], wT[:, 2 * H:3 * H]

    # fused input projection: columns [i_f, i_b, f_f, f_b, o_f, o_b, g_f, g_b]
    i_f, f_f, o_f, g_f = split_ifgo(p["W_ih_f"].T)
    i_b, f_b, o_b, g_b = split_ifgo(p["W_ih_b"].T)
    wih = jnp.concatenate([i_f, i_b, f_f, f_b, o_f, o_b, g_f, g_b], axis=1)

    bi_f, bf_f, bo_f, bg_f = split_ifgo((p["b_ih_f"] + p["b_hh_f"])[None, :])
    bi_b, bf_b, bo_b, bg_b = split_ifgo((p["b_ih_b"] + p["b_hh_b"])[None, :])
    b = jnp.concatenate([bi_f, bi_b, bf_f, bf_b, bo_f, bo_b, bg_f, bg_b], axis=1)

    # block-diagonal fused recurrent weight (2H, 8H)
    hi_f, hf_f, ho_f, hg_f = split_ifgo(p["W_hh_f"].T)
    hi_b, hf_b, ho_b, hg_b = split_ifgo(p["W_hh_b"].T)
    z = jnp.zeros((H, H), jnp.float32)
    top = jnp.concatenate([hi_f, z, hf_f, z, ho_f, z, hg_f, z], axis=1)
    bot = jnp.concatenate([z, hi_b, z, hf_b, z, ho_b, z, hg_b], axis=1)
    whh = jnp.concatenate([top, bot], axis=0)

    # single GroupNorm pooling matrix: P[n, m] = 1/gs if same group else 0
    gmat = jnp.repeat(jnp.eye(group_num, dtype=jnp.float32), gs, axis=0)  # (N, G)
    pool = (gmat @ gmat.T) / float(gs)                                    # (N, N)

    return dict(
        gamma=p["gn_w"][None, :], beta=p["gn_b"][None, :], pool=pool,
        wih=wih, whh=whh, b=b,
        wfc=p["fc_w"].T, bfc=p["fc_b"][None, :],
    )


# -----------------------------------------------------------------------------
# Wrapper (layout changes + pallas_call; generation-aware BK tiling)
# -----------------------------------------------------------------------------
def _auto_bk_tile(BK: int) -> int:
    """v7x (2 TC/chip): one tile per TensorCore. v5e/v6e (1 TC): one big tile."""
    try:
        kind = jax.devices()[0].device_kind.lower()
    except Exception:
        kind = ""
    if ("v7" in kind or "7x" in kind) and BK % 2 == 0 and BK >= 2:
        return BK // 2
    return BK


def _padded_bytes(shape, itemsize=4):
    """VMEM bytes of a tile after (8, 128) layout padding of the minor dims."""
    s = list(shape)
    if len(s) >= 1:
        s[-1] = -(-int(s[-1]) // 128) * 128
    if len(s) >= 2:
        s[-2] = -(-int(s[-2]) // 8) * 8
    n = 1
    for d in s:
        n *= max(int(d), 1)
    return n * itemsize


@functools.partial(jax.jit, static_argnames=("bk_tile",))
def rnn_module_forward(x, kp, bk_tile=None):
    """x: [B, K, T, N] -> [B, T, K, N] (matches RNNModule.forward)."""
    B, K, T, N = x.shape
    BK = B * K
    H = kp["wfc"].shape[0] // 2
    if bk_tile is None:
        bk_tile = _auto_bk_tile(BK)
    assert BK % bk_tile == 0, (BK, bk_tile)
    n_tiles = BK // bk_tile

    # [B, K, T, N] -> (B*K, T, N) -> (T, B*K, N)
    xk = jnp.transpose(x.reshape(BK, T, N).astype(jnp.float32), (1, 0, 2))

    weights = [kp["gamma"], kp["beta"], kp["pool"],
               kp["wih"], kp["whh"], kp["b"], kp["wfc"], kp["bfc"]]

    def wspec(a):
        nd = a.ndim
        return pl.BlockSpec(a.shape, lambda i, nd=nd: (0,) * nd)

    # padding-aware VMEM accounting: scratch + double-buffered IO + weights
    scratch_bytes = (_padded_bytes((T, bk_tile, 8 * H))
                     + _padded_bytes((T, bk_tile, 2 * H)))
    io_bytes = 2 * 2 * _padded_bytes((T, bk_tile, N))      # x & y, double-buffered
    w_bytes = 2 * sum(_padded_bytes(a.shape) for a in weights)
    need = scratch_bytes + io_bytes + w_bytes
    # 1.5x margin, floor 8 MiB, cap 48 MiB (headroom under v7x's 64 MiB VMEM)
    vmem_budget = int(min(48 * 1024 * 1024,
                          max(8 * 1024 * 1024, 1.5 * need + (1 << 20))))

    y = pl.pallas_call(
        rnn_module_kernel,
        out_shape=jax.ShapeDtypeStruct((T, BK, N), jnp.float32),
        grid=(n_tiles,),
        in_specs=[pl.BlockSpec((T, bk_tile, N), lambda i: (0, i, 0))]
                 + [wspec(a) for a in weights],
        out_specs=pl.BlockSpec((T, bk_tile, N), lambda i: (0, i, 0)),
        scratch_shapes=[
            pltpu.VMEM((T, bk_tile, 8 * H), jnp.float32),
            pltpu.VMEM((T, bk_tile, 2 * H), jnp.float32),
        ],
        compiler_params=pltpu.CompilerParams(
            dimension_semantics=("parallel",),     # sequences are independent
            vmem_limit_bytes=vmem_budget,
        ),
    )(xk, *weights)

    # (T, B*K, N) -> (T, B, K, N) -> [B, T, K, N]  (== x.permute(0, 2, 1, 3))
    return jnp.transpose(y.reshape(T, B, K, N), (1, 0, 2, 3))


# -----------------------------------------------------------------------------
# Pure-JAX reference (mirrors the PyTorch module) for correctness check
# -----------------------------------------------------------------------------
def reference_forward(x, p, group_num):
    B, K, T, N = x.shape
    BK = B * K
    H = p["W_hh_f"].shape[1]
    gs = N // group_num

    xk = x.reshape(BK, T, N).astype(jnp.float32)

    # GroupNorm on (BK, N, T) channel layout => stats over (group-chans, T)
    xr = xk.reshape(BK, T, group_num, gs)
    mean = xr.mean(axis=(1, 3), keepdims=True)
    var = ((xr - mean) ** 2).mean(axis=(1, 3), keepdims=True)
    xn = ((xr - mean) / jnp.sqrt(var + 1e-5)).reshape(BK, T, N)
    xn = xn * p["gn_w"] + p["gn_b"]

    def lstm(xseq, W_ih, W_hh, b_ih, b_hh):
        wih, whh, b = W_ih.T, W_hh.T, b_ih + b_hh

        def step(carry, xt):
            h, c = carry
            g = xt @ wih + h @ whh + b
            i = jax.nn.sigmoid(g[:, :H])
            f = jax.nn.sigmoid(g[:, H:2 * H])
            gg = jnp.tanh(g[:, 2 * H:3 * H])
            o = jax.nn.sigmoid(g[:, 3 * H:])
            c = f * c + i * gg
            h = o * jnp.tanh(c)
            return (h, c), h

        xs = jnp.transpose(xseq, (1, 0, 2))
        z = jnp.zeros((BK, H), jnp.float32)
        _, hs = jax.lax.scan(step, (z, z), xs)
        return jnp.transpose(hs, (1, 0, 2))

    hf = lstm(xn, p["W_ih_f"], p["W_hh_f"], p["b_ih_f"], p["b_hh_f"])
    hb = lstm(xn[:, ::-1, :], p["W_ih_b"], p["W_hh_b"], p["b_ih_b"], p["b_hh_b"])[:, ::-1, :]
    out = jnp.concatenate([hf, hb], axis=-1) @ p["fc_w"].T + p["fc_b"]
    y = out.reshape(B, K, T, N) + x
    return jnp.transpose(y, (0, 2, 1, 3))


# -----------------------------------------------------------------------------
# Deterministic parameter construction + run
# -----------------------------------------------------------------------------
def make_params(key, N, H):
    ks = jax.random.split(key, 12)
    scale = 0.1
    return dict(
        gn_w=1.0 + 0.1 * jax.random.normal(ks[0], (N,), jnp.float32),
        gn_b=0.1 * jax.random.normal(ks[1], (N,), jnp.float32),
        W_ih_f=scale * jax.random.normal(ks[2], (4 * H, N), jnp.float32),
        W_hh_f=scale * jax.random.normal(ks[3], (4 * H, H), jnp.float32),
        b_ih_f=scale * jax.random.normal(ks[4], (4 * H,), jnp.float32),
        b_hh_f=scale * jax.random.normal(ks[5], (4 * H,), jnp.float32),
        W_ih_b=scale * jax.random.normal(ks[6], (4 * H, N), jnp.float32),
        W_hh_b=scale * jax.random.normal(ks[7], (4 * H, H), jnp.float32),
        b_ih_b=scale * jax.random.normal(ks[8], (4 * H,), jnp.float32),
        b_hh_b=scale * jax.random.normal(ks[9], (4 * H,), jnp.float32),
        fc_w=scale * jax.random.normal(ks[10], (N, 2 * H), jnp.float32),
        fc_b=scale * jax.random.normal(ks[11], (N,), jnp.float32),
    )


if __name__ == "__main__":
    # group_num=4, input_dim=32, hidden=32; B*K = 16 sequences
    B, K, T, N, H, G = 2, 8, 8, 32, 32, 4

    key = jax.random.PRNGKey(0)
    kx, kw = jax.random.split(key)
    x = jax.random.normal(kx, (B, K, T, N), jnp.float32)
    params = make_params(kw, N, H)
    kparams = prepare_kernel_params(params, G)

    # bk_tile auto-selected: 1 tile on single-TC v5e/v6e, 2 tiles on v7x
    y = rnn_module_forward(x, kparams)
    y = jax.block_until_ready(y)

    y_ref = jax.block_until_ready(reference_forward(x, params, G))

    assert y.shape == (B, T, K, N), y.shape
    assert bool(jnp.all(jnp.isfinite(y)))
    err = float(jnp.max(jnp.abs(y - y_ref)))
    assert jnp.allclose(y, y_ref, rtol=2e-3, atol=2e-3), err
    print("KERNEL_OK")
</pallas_src>

<mosaic_0001>
module attributes {stable_mosaic.version = 11 : i64} {
  func.func @rnn_module_kernel(%arg0: i32, %arg1: memref<8x16x32xf32, #tpu.memory_space<vmem>>, %arg2: memref<1x32xf32, #tpu.memory_space<vmem>>, %arg3: memref<1x32xf32, #tpu.memory_space<vmem>>, %arg4: memref<32x32xf32, #tpu.memory_space<vmem>>, %arg5: memref<32x256xf32, #tpu.memory_space<vmem>>, %arg6: memref<64x256xf32, #tpu.memory_space<vmem>>, %arg7: memref<1x256xf32, #tpu.memory_space<vmem>>, %arg8: memref<64x32xf32, #tpu.memory_space<vmem>>, %arg9: memref<1x32xf32, #tpu.memory_space<vmem>>, %arg10: memref<8x16x32xf32, #tpu.memory_space<vmem>>, %arg11: memref<8x16x256xf32, #tpu.memory_space<vmem>>, %arg12: memref<8x16x64xf32, #tpu.memory_space<vmem>>) attributes {dimension_semantics = [#tpu.dimension_semantics<parallel>], iteration_bounds = array<i64: 1>, scalar_prefetch = 0 : i64, scratch_operands = 2 : i64, tpu.core_type = #tpu.core_type<tc>, window_params = [{transform_indices = @transform_0, window_bounds = array<i64: 8, 16, 32>}, {pipeline_mode = #tpu.pipeline_mode<synchronous>, transform_indices = @transform_1, window_bounds = array<i64: 1, 32>}, {pipeline_mode = #tpu.pipeline_mode<synchronous>, transform_indices = @transform_2, window_bounds = array<i64: 1, 32>}, {pipeline_mode = #tpu.pipeline_mode<synchronous>, transform_indices = @transform_3, window_bounds = array<i64: 32, 32>}, {pipeline_mode = #tpu.pipeline_mode<synchronous>, transform_indices = @transform_4, window_bounds = array<i64: 32, 256>}, {pipeline_mode = #tpu.pipeline_mode<synchronous>, transform_indices = @transform_5, window_bounds = array<i64: 64, 256>}, {pipeline_mode = #tpu.pipeline_mode<synchronous>, transform_indices = @transform_6, window_bounds = array<i64: 1, 256>}, {pipeline_mode = #tpu.pipeline_mode<synchronous>, transform_indices = @transform_7, window_bounds = array<i64: 64, 32>}, {pipeline_mode = #tpu.pipeline_mode<synchronous>, transform_indices = @transform_8, window_bounds = array<i64: 1, 32>}, {transform_indices = @transform_9, window_bounds = array<i64: 8, 16, 32>}]} {
    %c0 = arith.constant 0 : index
    %c0_0 = arith.constant 0 : index
    %c0_1 = arith.constant 0 : index
    %0 = vector.load %arg1[%c0, %c0_0, %c0_1] : memref<8x16x32xf32, #tpu.memory_space<vmem>>, vector<8x16x32xf32>
    %c0_2 = arith.constant 0 : index
    %c0_3 = arith.constant 0 : index
    %1 = vector.load %arg4[%c0_2, %c0_3] : memref<32x32xf32, #tpu.memory_space<vmem>>, vector<32x32xf32>
    %cst = arith.constant dense<0.000000e+00> : vector<16x32xf32>
    %2 = vector.multi_reduction <add>, %0, %cst [0] : vector<8x16x32xf32> to vector<16x32xf32>
    %cst_4 = arith.constant dense<0.000000e+00> : vector<16x32xf32>
    %3 = tpu.matmul %2, %1, %cst_4 {dimension_numbers = #tpu.dot_dimension_numbers<[1], [0], [0], [1], [0, 0, 1, 1], [], []>} : vector<16x32xf32>, vector<32x32xf32>, vector<16x32xf32> -> vector<16x32xf32>
    %cst_5 = arith.constant 1.250000e-01 : f32
    %4 = vector.broadcast %cst_5 : f32 to vector<16x32xf32>
    %5 = arith.mulf %3, %4 : vector<16x32xf32>
    %6 = vector.shape_cast %5 : vector<16x32xf32> to vector<1x16x32xf32>
    %7 = vector.broadcast %6 : vector<1x16x32xf32> to vector<8x16x32xf32>
    %8 = arith.subf %0, %7 : vector<8x16x32xf32>
    %9 = arith.mulf %8, %8 : vector<8x16x32xf32>
    %cst_6 = arith.constant dense<0.000000e+00> : vector<16x32xf32>
    %10 = vector.multi_reduction <add>, %9, %cst_6 [0] : vector<8x16x32xf32> to vector<16x32xf32>
    %cst_7 = arith.constant dense<0.000000e+00> : vector<16x32xf32>
    %11 = tpu.matmul %10, %1, %cst_7 {dimension_numbers = #tpu.dot_dimension_numbers<[1], [0], [0], [1], [0, 0, 1, 1], [], []>} : vector<16x32xf32>, vector<32x32xf32>, vector<16x32xf32> -> vector<16x32xf32>
    %cst_8 = arith.constant 1.250000e-01 : f32
    %12 = vector.broadcast %cst_8 : f32 to vector<16x32xf32>
    %13 = arith.mulf %11, %12 : vector<16x32xf32>
    %cst_9 = arith.constant 9.99999974E-6 : f32
    %14 = vector.broadcast %cst_9 : f32 to vector<16x32xf32>
    %15 = arith.addf %13, %14 : vector<16x32xf32>
    %16 = math.rsqrt %15 : vector<16x32xf32>
    %17 = vector.shape_cast %16 : vector<16x32xf32> to vector<1x16x32xf32>
    %18 = vector.broadcast %17 : vector<1x16x32xf32> to vector<8x16x32xf32>
    %19 = arith.mulf %8, %18 : vector<8x16x32xf32>
    %c0_10 = arith.constant 0 : index
    %c0_11 = arith.constant 0 : index
    %20 = vector.load %arg2[%c0_10, %c0_11] : memref<1x32xf32, #tpu.memory_space<vmem>>, vector<1x32xf32>
    %21 = vector.shape_cast %20 : vector<1x32xf32> to vector<1x1x32xf32>
    %22 = vector.broadcast %21 : vector<1x1x32xf32> to vector<8x16x32xf32>
    %23 = arith.mulf %19, %22 : vector<8x16x32xf32>
    %c0_12 = arith.constant 0 : index
    %c0_13 = arith.constant 0 : index
    %24 = vector.load %arg3[%c0_12, %c0_13] : memref<1x32xf32, #tpu.memory_space<vmem>>, vector<1x32xf32>
    %25 = vector.shape_cast %24 : vector<1x32xf32> to vector<1x1x32xf32>
    %26 = vector.broadcast %25 : vector<1x1x32xf32> to vector<8x16x32xf32>
    %27 = arith.addf %23, %26 : vector<8x16x32xf32>
    %28 = vector.shape_cast %27 : vector<8x16x32xf32> to vector<128x32xf32>
    %c0_14 = arith.constant 0 : index
    %c0_15 = arith.constant 0 : index
    %29 = vector.load %arg5[%c0_14, %c0_15] : memref<32x256xf32, #tpu.memory_space<vmem>>, vector<32x256xf32>
    %cst_16 = arith.constant dense<0.000000e+00> : vector<128x256xf32>
    %30 = tpu.matmul %28, %29, %cst_16 {dimension_numbers = #tpu.dot_dimension_numbers<[1], [0], [0], [1], [0, 0, 1, 1], [], []>} : vector<128x32xf32>, vector<32x256xf32>, vector<128x256xf32> -> vector<128x256xf32>
    %c0_17 = arith.constant 0 : index
    %c0_18 = arith.constant 0 : index
    %31 = vector.load %arg7[%c0_17, %c0_18] : memref<1x256xf32, #tpu.memory_space<vmem>>, vector<1x256xf32>
    %32 = vector.broadcast %31 : vector<1x256xf32> to vector<128x256xf32>
    %33 = arith.addf %30, %32 : vector<128x256xf32>
    %34 = vector.shape_cast %33 : vector<128x256xf32> to vector<8x16x256xf32>
    %c0_19 = arith.constant 0 : index
    %c0_20 = arith.constant 0 : index
    %c0_21 = arith.constant 0 : index
    %35 = vector.load %arg11[%c0_19, %c0_20, %c0_21] : memref<8x16x256xf32, #tpu.memory_space<vmem>>, vector<8x16x256xf32>
    tpu.vector_store %arg11[%c0_19, %c0_20, %c0_21], %34 {strides = array<i32>} : memref<8x16x256xf32, #tpu.memory_space<vmem>>, vector<8x16x256xf32>,
    %36 = tpu.iota {dimensions = array<i32: 1>} : vector<16x256xi32>
    %c64_i32 = arith.constant 64 : i32
    %c0_i32 = arith.constant 0 : i32
    %37 = arith.cmpi eq, %c64_i32, %c0_i32 : i32
    %c1_i32 = arith.constant 1 : i32
    %38 = arith.select %37, %c1_i32, %c64_i32 : i32
    %39 = vector.broadcast %38 : i32 to vector<16x256xi32>
    %40 = arith.remsi %36, %39 : vector<16x256xi32>
    %c0_i32_22 = arith.constant 0 : i32
    %41 = vector.broadcast %c0_i32_22 : i32 to vector<16x256xi32>
    %42 = arith.cmpi ne, %40, %41 : vector<16x256xi32>
    %c0_i32_23 = arith.constant 0 : i32
    %43 = vector.broadcast %c0_i32_23 : i32 to vector<16x256xi32>
    %44 = arith.cmpi slt, %40, %43 : vector<16x256xi32>
    %c0_i32_24 = arith.constant 0 : i32
    %45 = arith.cmpi slt, %38, %c0_i32_24 : i32
    %46 = vector.broadcast %45 : i1 to vector<16x256xi1>
    %47 = vector.broadcast %46 : vector<16x256xi1> to vector<16x256xi1>
    %48 = arith.xori %44, %47 : vector<16x256xi1>
    %49 = arith.andi %48, %42 : vector<16x256xi1>
    %50 = vector.broadcast %38 : i32 to vector<16x256xi32>
    %51 = arith.addi %40, %50 : vector<16x256xi32>
    %52 = arith.select %49, %51, %40 : vector<16x256xi1>, vector<16x256xi32>
    %c32_i32 = arith.constant 32 : i32
    %53 = vector.broadcast %c32_i32 : i32 to vector<16x256xi32>
    %54 = arith.cmpi slt, %52, %53 : vector<16x256xi32>
    %c0_25 = arith.constant 0 : index
    %c0_26 = arith.constant 0 : index
    %c0_27 = arith.constant 0 : index
    %55 = vector.load %arg11[%c0_25, %c0_26, %c0_27] : memref<8x16x256xf32, #tpu.memory_space<vmem>>, vector<1x16x256xf32>
    %56 = vector.shape_cast %55 : vector<1x16x256xf32> to vector<16x256xf32>
    %c7 = arith.constant 7 : index
    %c0_28 = arith.constant 0 : index
    %c0_29 = arith.constant 0 : index
    %57 = vector.load %arg11[%c7, %c0_28, %c0_29] : memref<8x16x256xf32, #tpu.memory_space<vmem>>, vector<1x16x256xf32>
    %58 = vector.shape_cast %57 : vector<1x16x256xf32> to vector<16x256xf32>
    %59 = arith.select %54, %56, %58 : vector<16x256xi1>, vector<16x256xf32>
    %c0_30 = arith.constant 0 : index
    %c0_31 = arith.constant 0 : index
    %c0_32 = arith.constant 0 : index
    %60 = vector.load %arg11[%c0_30, %c0_31, %c0_32] : memref<8x16x256xf32, #tpu.memory_space<vmem>>, vector<1x16x256xf32>
    %61 = vector.shape_cast %60 : vector<1x16x256xf32> to vector<16x256xf32>
    %62 = vector.shape_cast %59 : vector<16x256xf32> to vector<1x16x256xf32>
    tpu.vector_store %arg11[%c0_30, %c0_31, %c0_32], %62 {strides = array<i32>} : memref<8x16x256xf32, #tpu.memory_space<vmem>>, vector<1x16x256xf32>,
    %63 = arith.select %54, %58, %56 : vector<16x256xi1>, vector<16x256xf32>
    %c7_33 = arith.constant 7 : index
    %c0_34 = arith.constant 0 : index
    %c0_35 = arith.constant 0 : index
    %64 = vector.load %arg11[%c7_33, %c0_34, %c0_35] : memref<8x16x256xf32, #tpu.memory_space<vmem>>, vector<1x16x256xf32>
    %65 = vector.shape_cast %64 : vector<1x16x256xf32> to vector<16x256xf32>
    %66 = vector.shape_cast %63 : vector<16x256xf32> to vector<1x16x256xf32>
    tpu.vector_store %arg11[%c7_33, %c0_34, %c0_35], %66 {strides = array<i32>} : memref<8x16x256xf32, #tpu.memory_space<vmem>>, vector<1x16x256xf32>,
    %c1 = arith.constant 1 : index
    %c0_36 = arith.constant 0 : index
    %c0_37 = arith.constant 0 : index
    %67 = vector.load %arg11[%c1, %c0_36, %c0_37] : memref<8x16x256xf32, #tpu.memory_space<vmem>>, vector<1x16x256xf32>
    %68 = vector.shape_cast %67 : vector<1x16x256xf32> to vector<16x256xf32>
    %c6 = arith.constant 6 : index
    %c0_38 = arith.constant 0 : index
    %c0_39 = arith.constant 0 : index
    %69 = vector.load %arg11[%c6, %c0_38, %c0_39] : memref<8x16x256xf32, #tpu.memory_space<vmem>>, vector<1x16x256xf32>
    %70 = vector.shape_cast %69 : vector<1x16x256xf32> to vector<16x256xf32>
    %71 = arith.select %54, %68, %70 : vector<16x256xi1>, vector<16x256xf32>
    %c1_40 = arith.constant 1 : index
    %c0_41 = arith.constant 0 : index
    %c0_42 = arith.constant 0 : index
    %72 = vector.load %arg11[%c1_40, %c0_41, %c0_42] : memref<8x16x256xf32, #tpu.memory_space<vmem>>, vector<1x16x256xf32>
    %73 = vector.shape_cast %72 : vector<1x16x256xf32> to vector<16x256xf32>
    %74 = vector.shape_cast %71 : vector<16x256xf32> to vector<1x16x256xf32>
    tpu.vector_store %arg11[%c1_40, %c0_41, %c0_42], %74 {strides = array<i32>} : memref<8x16x256xf32, #tpu.memory_space<vmem>>, vector<1x16x256xf32>,
    %75 = arith.select %54, %70, %68 : vector<16x256xi1>, vector<16x256xf32>
    %c6_43 = arith.constant 6 : index
    %c0_44 = arith.constant 0 : index
    %c0_45 = arith.constant 0 : index
    %76 = vector.load %arg11[%c6_43, %c0_44, %c0_45] : memref<8x16x256xf32, #tpu.memory_space<vmem>>, vector<1x16x256xf32>
    %77 = vector.shape_cast %76 : vector<1x16x256xf32> to vector<16x256xf32>
    %78 = vector.shape_cast %75 : vector<16x256xf32> to vector<1x16x256xf32>
    tpu.vector_store %arg11[%c6_43, %c0_44, %c0_45], %78 {strides = array<i32>} : memref<8x16x256xf32, #tpu.memory_space<vmem>>, vector<1x16x256xf32>,
    %c2 = arith.constant 2 : index
    %c0_46 = arith.constant 0 : index
    %c0_47 = arith.constant 0 : index
    %79 = vector.load %arg11[%c2, %c0_46, %c0_47] : memref<8x16x256xf32, #tpu.memory_space<vmem>>, vector<1x16x256xf32>
    %80 = vector.shape_cast %79 : vector<1x16x256xf32> to vector<16x256xf32>
    %c5 = arith.constant 5 : index
    %c0_48 = arith.constant 0 : index
    %c0_49 = arith.constant 0 : index
    %81 = vector.load %arg11[%c5, %c0_48, %c0_49] : memref<8x16x256xf32, #tpu.memory_space<vmem>>, vector<1x16x256xf32>
    %82 = vector.shape_cast %81 : vector<1x16x256xf32> to vector<16x256xf32>
    %83 = arith.select %54, %80, %82 : vector<16x256xi1>, vector<16x256xf32>
    %c2_50 = arith.constant 2 : index
    %c0_51 = arith.constant 0 : index
    %c0_52 = arith.constant 0 : index
    %84 = vector.load %arg11[%c2_50, %c0_51, %c0_52] : memref<8x16x256xf32, #tpu.memory_space<vmem>>, vector<1x16x256xf32>
    %85 = vector.shape_cast %84 : vector<1x16x256xf32> to vector<16x256xf32>
    %86 = vector.shape_cast %83 : vector<16x256xf32> to vector<1x16x256xf32>
    tpu.vector_store %arg11[%c2_50, %c0_51, %c0_52], %86 {strides = array<i32>} : memref<8x16x256xf32, #tpu.memory_space<vmem>>, vector<1x16x256xf32>,
    %87 = arith.select %54, %82, %80 : vector<16x256xi1>, vector<16x256xf32>
    %c5_53 = arith.constant 5 : index
    %c0_54 = arith.constant 0 : index
    %c0_55 = arith.constant 0 : index
    %88 = vector.load %arg11[%c5_53, %c0_54, %c0_55] : memref<8x16x256xf32, #tpu.memory_space<vmem>>, vector<1x16x256xf32>
    %89 = vector.shape_cast %88 : vector<1x16x256xf32> to vector<16x256xf32>
    %90 = vector.shape_cast %87 : vector<16x256xf32> to vector<1x16x256xf32>
    tpu.vector_store %arg11[%c5_53, %c0_54, %c0_55], %90 {strides = array<i32>} : memref<8x16x256xf32, #tpu.memory_space<vmem>>, vector<1x16x256xf32>,
    %c3 = arith.constant 3 : index
    %c0_56 = arith.constant 0 : index
    %c0_57 = arith.constant 0 : index
    %91 = vector.load %arg11[%c3, %c0_56, %c0_57] : memref<8x16x256xf32, #tpu.memory_space<vmem>>, vector<1x16x256xf32>
    %92 = vector.shape_cast %91 : vector<1x16x256xf32> to vector<16x256xf32>
    %c4 = arith.constant 4 : index
    %c0_58 = arith.constant 0 : index
    %c0_59 = arith.constant 0 : index
    %93 = vector.load %arg11[%c4, %c0_58, %c0_59] : memref<8x16x256xf32, #tpu.memory_space<vmem>>, vector<1x16x256xf32>
    %94 = vector.shape_cast %93 : vector<1x16x256xf32> to vector<16x256xf32>
    %95 = arith.select %54, %92, %94 : vector<16x256xi1>, vector<16x256xf32>
    %c3_60 = arith.constant 3 : index
    %c0_61 = arith.constant 0 : index
    %c0_62 = arith.constant 0 : index
    %96 = vector.load %arg11[%c3_60, %c0_61, %c0_62] : memref<8x16x256xf32, #tpu.memory_space<vmem>>, vector<1x16x256xf32>
    %97 = vector.shape_cast %96 : vector<1x16x256xf32> to vector<16x256xf32>
    %98 = vector.shape_cast %95 : vector<16x256xf32> to vector<1x16x256xf32>
    tpu.vector_store %arg11[%c3_60, %c0_61, %c0_62], %98 {strides = array<i32>} : memref<8x16x256xf32, #tpu.memory_space<vmem>>, vector<1x16x256xf32>,
    %99 = arith.select %54, %94, %92 : vector<16x256xi1>, vector<16x256xf32>
    %c4_63 = arith.constant 4 : index
    %c0_64 = arith.constant 0 : index
    %c0_65 = arith.constant 0 : index
    %100 = vector.load %arg11[%c4_63, %c0_64, %c0_65] : memref<8x16x256xf32, #tpu.memory_space<vmem>>, vector<1x16x256xf32>
    %101 = vector.shape_cast %100 : vector<1x16x256xf32> to vector<16x256xf32>
    %102 = vector.shape_cast %99 : vector<16x256xf32> to vector<1x16x256xf32>
    tpu.vector_store %arg11[%c4_63, %c0_64, %c0_65], %102 {strides = array<i32>} : memref<8x16x256xf32, #tpu.memory_space<vmem>>, vector<1x16x256xf32>,
    %c0_66 = arith.constant 0 : index
    %c0_67 = arith.constant 0 : index
    %103 = vector.load %arg6[%c0_66, %c0_67] : memref<64x256xf32, #tpu.memory_space<vmem>>, vector<64x256xf32>
    %cst_68 = arith.constant 0.000000e+00 : f32
    %104 = vector.broadcast %cst_68 : f32 to vector<16x64xf32>
    %cst_69 = arith.constant 0.000000e+00 : f32
    %105 = vector.broadcast %cst_69 : f32 to vector<16x64xf32>
    %c0_i32_70 = arith.constant 0 : i32
    %106 = arith.index_cast %c0_i32_70 : i32 to index
    %c0_71 = arith.constant 0 : index
    %c0_72 = arith.constant 0 : index
    %107 = vector.load %arg11[%106, %c0_71, %c0_72] : memref<8x16x256xf32, #tpu.memory_space<vmem>>, vector<1x16x256xf32>
    %108 = vector.shape_cast %107 : vector<1x16x256xf32> to vector<16x256xf32>
    %cst_73 = arith.constant dense<0.000000e+00> : vector<16x256xf32>
    %109 = tpu.matmul %104, %103, %cst_73 {dimension_numbers = #tpu.dot_dimension_numbers<[1], [0], [0], [1], [0, 0, 1, 1], [], []>} : vector<16x64xf32>, vector<64x256xf32>, vector<16x256xf32> -> vector<16x256xf32>
    %110 = arith.addf %108, %109 : vector<16x256xf32>
    %111 = vector.extract_strided_slice %110 {offsets = [0, 0], sizes = [16, 192], strides = [1, 1]} : vector<16x256xf32> to vector<16x192xf32>
    %112 = arith.negf %111 : vector<16x192xf32>
    %113 = math.exp %112 : vector<16x192xf32>
    %cst_74 = arith.constant 1.000000e+00 : f32
    %114 = vector.broadcast %cst_74 : f32 to vector<16x192xf32>
    %115 = arith.addf %114, %113 : vector<16x192xf32>
    %116 = arith.divf %114, %115 : vector<16x192xf32>
    %117 = vector.extract_strided_slice %116 {offsets = [0, 0], sizes = [16, 64], strides = [1, 1]} : vector<16x192xf32> to vector<16x64xf32>
    %118 = vector.extract_strided_slice %116 {offsets = [0, 64], sizes = [16, 64], strides = [1, 1]} : vector<16x192xf32> to vector<16x64xf32>
    %119 = vector.extract_strided_slice %116 {offsets = [0, 128], sizes = [16, 64], strides = [1, 1]} : vector<16x192xf32> to vector<16x64xf32>
    %120 = vector.extract_strided_slice %110 {offsets = [0, 192], sizes = [16, 64], strides = [1, 1]} : vector<16x256xf32> to vector<16x64xf32>
    %121 = math.tanh %120 : vector<16x64xf32>
    %122 = arith.mulf %118, %105 : vector<16x64xf32>
    %123 = arith.mulf %117, %121 : vector<16x64xf32>
    %124 = arith.addf %122, %123 : vector<16x64xf32>
    %125 = math.tanh %124 : vector<16x64xf32>
    %126 = arith.mulf %119, %125 : vector<16x64xf32>
    %127 = arith.index_cast %c0_i32_70 : i32 to index
    %c0_75 = arith.constant 0 : index
    %c0_76 = arith.constant 0 : index
    %128 = vector.load %arg12[%127, %c0_75, %c0_76] : memref<8x16x64xf32, #tpu.memory_space<vmem>>, vector<1x16x64xf32>
    %129 = vector.shape_cast %128 : vector<1x16x64xf32> to vector<16x64xf32>
    %130 = vector.shape_cast %126 : vector<16x64xf32> to vector<1x16x64xf32>
    tpu.vector_store %arg12[%127, %c0_75, %c0_76], %130 {strides = array<i32>} : memref<8x16x64xf32, #tpu.memory_space<vmem>>, vector<1x16x64xf32>,
    %c1_i32_77 = arith.constant 1 : i32
    %131 = arith.index_cast %c1_i32_77 : i32 to index
    %c0_78 = arith.constant 0 : index
    %c0_79 = arith.constant 0 : index
    %132 = vector.load %arg11[%131, %c0_78, %c0_79] : memref<8x16x256xf32, #tpu.memory_space<vmem>>, vector<1x16x256xf32>
    %133 = vector.shape_cast %132 : vector<1x16x256xf32> to vector<16x256xf32>
    %cst_80 = arith.constant dense<0.000000e+00> : vector<16x256xf32>
    %134 = tpu.matmul %126, %103, %cst_80 {dimension_numbers = #tpu.dot_dimension_numbers<[1], [0], [0], [1], [0, 0, 1, 1], [], []>} : vector<16x64xf32>, vector<64x256xf32>, vector<16x256xf32> -> vector<16x256xf32>
    %135 = arith.addf %133, %134 : vector<16x256xf32>
    %136 = vector.extract_strided_slice %135 {offsets = [0, 0], sizes = [16, 192], strides = [1, 1]} : vector<16x256xf32> to vector<16x192xf32>
    %137 = arith.negf %136 : vector<16x192xf32>
    %138 = math.exp %137 : vector<16x192xf32>
    %cst_81 = arith.constant 1.000000e+00 : f32
    %139 = vector.broadcast %cst_81 : f32 to vector<16x192xf32>
    %140 = arith.addf %139, %138 : vector<16x192xf32>
    %141 = arith.divf %139, %140 : vector<16x192xf32>
    %142 = vector.extract_strided_slice %141 {offsets = [0, 0], sizes = [16, 64], strides = [1, 1]} : vector<16x192xf32> to vector<16x64xf32>
    %143 = vector.extract_strided_slice %141 {offsets = [0, 64], sizes = [16, 64], strides = [1, 1]} : vector<16x192xf32> to vector<16x64xf32>
    %144 = vector.extract_strided_slice %141 {offsets = [0, 128], sizes = [16, 64], strides = [1, 1]} : vector<16x192xf32> to vector<16x64xf32>
    %145 = vector.extract_strided_slice %135 {offsets = [0, 192], sizes = [16, 64], strides = [1, 1]} : vector<16x256xf32> to vector<16x64xf32>
    %146 = math.tanh %145 : vector<16x64xf32>
    %147 = arith.mulf %143, %124 : vector<16x64xf32>
    %148 = arith.mulf %142, %146 : vector<16x64xf32>
    %149 = arith.addf %147, %148 : vector<16x64xf32>
    %150 = math.tanh %149 : vector<16x64xf32>
    %151 = arith.mulf %144, %150 : vector<16x64xf32>
    %152 = arith.index_cast %c1_i32_77 : i32 to index
    %c0_82 = arith.constant 0 : index
    %c0_83 = arith.constant 0 : index
    %153 = vector.load %arg12[%152, %c0_82, %c0_83] : memref<8x16x64xf32, #tpu.memory_space<vmem>>, vector<1x16x64xf32>
    %154 = vector.shape_cast %153 : vector<1x16x64xf32> to vector<16x64xf32>
    %155 = vector.shape_cast %151 : vector<16x64xf32> to vector<1x16x64xf32>
    tpu.vector_store %arg12[%152, %c0_82, %c0_83], %155 {strides = array<i32>} : memref<8x16x64xf32, #tpu.memory_space<vmem>>, vector<1x16x64xf32>,
    %c2_i32 = arith.constant 2 : i32
    %156 = arith.index_cast %c2_i32 : i32 to index
    %c0_84 = arith.constant 0 : index
    %c0_85 = arith.constant 0 : index
    %157 = vector.load %arg11[%156, %c0_84, %c0_85] : memref<8x16x256xf32, #tpu.memory_space<vmem>>, vector<1x16x256xf32>
    %158 = vector.shape_cast %157 : vector<1x16x256xf32> to vector<16x256xf32>
    %cst_86 = arith.constant dense<0.000000e+00> : vector<16x256xf32>
    %159 = tpu.matmul %151, %103, %cst_86 {dimension_numbers = #tpu.dot_dimension_numbers<[1], [0], [0], [1], [0, 0, 1, 1], [], []>} : vector<16x64xf32>, vector<64x256xf32>, vector<16x256xf32> -> vector<16x256xf32>
    %160 = arith.addf %158, %159 : vector<16x256xf32>
    %161 = vector.extract_strided_slice %160 {offsets = [0, 0], sizes = [16, 192], strides = [1, 1]} : vector<16x256xf32> to vector<16x192xf32>
    %162 = arith.negf %161 : vector<16x192xf32>
    %163 = math.exp %162 : vector<16x192xf32>
    %cst_87 = arith.constant 1.000000e+00 : f32
    %164 = vector.broadcast %cst_87 : f32 to vector<16x192xf32>
    %165 = arith.addf %164, %163 : vector<16x192xf32>
    %166 = arith.divf %164, %165 : vector<16x192xf32>
    %167 = vector.extract_strided_slice %166 {offsets = [0, 0], sizes = [16, 64], strides = [1, 1]} : vector<16x192xf32> to vector<16x64xf32>
    %168 = vector.extract_strided_slice %166 {offsets = [0, 64], sizes = [16, 64], strides = [1, 1]} : vector<16x192xf32> to vector<16x64xf32>
    %169 = vector.extract_strided_slice %166 {offsets = [0, 128], sizes = [16, 64], strides = [1, 1]} : vector<16x192xf32> to vector<16x64xf32>
    %170 = vector.extract_strided_slice %160 {offsets = [0, 192], sizes = [16, 64], strides = [1, 1]} : vector<16x256xf32> to vector<16x64xf32>
    %171 = math.tanh %170 : vector<16x64xf32>
    %172 = arith.mulf %168, %149 : vector<16x64xf32>
    %173 = arith.mulf %167, %171 : vector<16x64xf32>
    %174 = arith.addf %172, %173 : vector<16x64xf32>
    %175 = math.tanh %174 : vector<16x64xf32>
    %176 = arith.mulf %169, %175 : vector<16x64xf32>
    %177 = arith.index_cast %c2_i32 : i32 to index
    %c0_88 = arith.constant 0 : index
    %c0_89 = arith.constant 0 : index
    %178 = vector.load %arg12[%177, %c0_88, %c0_89] : memref<8x16x64xf32, #tpu.memory_space<vmem>>, vector<1x16x64xf32>
    %179 = vector.shape_cast %178 : vector<1x16x64xf32> to vector<16x64xf32>
    %180 = vector.shape_cast %176 : vector<16x64xf32> to vector<1x16x64xf32>
    tpu.vector_store %arg12[%177, %c0_88, %c0_89], %180 {strides = array<i32>} : memref<8x16x64xf32, #tpu.memory_space<vmem>>, vector<1x16x64xf32>,
    %c3_i32 = arith.constant 3 : i32
    %181 = arith.index_cast %c3_i32 : i32 to index
    %c0_90 = arith.constant 0 : index
    %c0_91 = arith.constant 0 : index
    %182 = vector.load %arg11[%181, %c0_90, %c0_91] : memref<8x16x256xf32, #tpu.memory_space<vmem>>, vector<1x16x256xf32>
    %183 = vector.shape_cast %182 : vector<1x16x256xf32> to vector<16x256xf32>
    %cst_92 = arith.constant dense<0.000000e+00> : vector<16x256xf32>
    %184 = tpu.matmul %176, %103, %cst_92 {dimension_numbers = #tpu.dot_dimension_numbers<[1], [0], [0], [1], [0, 0, 1, 1], [], []>} : vector<16x64xf32>, vector<64x256xf32>, vector<16x256xf32> -> vector<16x256xf32>
    %185 = arith.addf %183, %184 : vector<16x256xf32>
    %186 = vector.extract_strided_slice %185 {offsets = [0, 0], sizes = [16, 192], strides = [1, 1]} : vector<16x256xf32> to vector<16x192xf32>
    %187 = arith.negf %186 : vector<16x192xf32>
    %188 = math.exp %187 : vector<16x192xf32>
    %cst_93 = arith.constant 1.000000e+00 : f32
    %189 = vector.broadcast %cst_93 : f32 to vector<16x192xf32>
    %190 = arith.addf %189, %188 : vector<16x192xf32>
    %191 = arith.divf %189, %190 : vector<16x192xf32>
    %192 = vector.extract_strided_slice %191 {offsets = [0, 0], sizes = [16, 64], strides = [1, 1]} : vector<16x192xf32> to vector<16x64xf32>
    %193 = vector.extract_strided_slice %191 {offsets = [0, 64], sizes = [16, 64], strides = [1, 1]} : vector<16x192xf32> to vector<16x64xf32>
    %194 = vector.extract_strided_slice %191 {offsets = [0, 128], sizes = [16, 64], strides = [1, 1]} : vector<16x192xf32> to vector<16x64xf32>
    %195 = vector.extract_strided_slice %185 {offsets = [0, 192], sizes = [16, 64], strides = [1, 1]} : vector<16x256xf32> to vector<16x64xf32>
    %196 = math.tanh %195 : vector<16x64xf32>
    %197 = arith.mulf %193, %174 : vector<16x64xf32>
    %198 = arith.mulf %192, %196 : vector<16x64xf32>
    %199 = arith.addf %197, %198 : vector<16x64xf32>
    %200 = math.tanh %199 : vector<16x64xf32>
    %201 = arith.mulf %194, %200 : vector<16x64xf32>
    %202 = arith.index_cast %c3_i32 : i32 to index
    %c0_94 = arith.constant 0 : index
    %c0_95 = arith.constant 0 : index
    %203 = vector.load %arg12[%202, %c0_94, %c0_95] : memref<8x16x64xf32, #tpu.memory_space<vmem>>, vector<1x16x64xf32>
    %204 = vector.shape_cast %203 : vector<1x16x64xf32> to vector<16x64xf32>
    %205 = vector.shape_cast %201 : vector<16x64xf32> to vector<1x16x64xf32>
    tpu.vector_store %arg12[%202, %c0_94, %c0_95], %205 {strides = array<i32>} : memref<8x16x64xf32, #tpu.memory_space<vmem>>, vector<1x16x64xf32>,
    %c4_i32 = arith.constant 4 : i32
    %206 = arith.index_cast %c4_i32 : i32 to index
    %c0_96 = arith.constant 0 : index
    %c0_97 = arith.constant 0 : index
    %207 = vector.load %arg11[%206, %c0_96, %c0_97] : memref<8x16x256xf32, #tpu.memory_space<vmem>>, vector<1x16x256xf32>
    %208 = vector.shape_cast %207 : vector<1x16x256xf32> to vector<16x256xf32>
    %cst_98 = arith.constant dense<0.000000e+00> : vector<16x256xf32>
    %209 = tpu.matmul %201, %103, %cst_98 {dimension_numbers = #tpu.dot_dimension_numbers<[1], [0], [0], [1], [0, 0, 1, 1], [], []>} : vector<16x64xf32>, vector<64x256xf32>, vector<16x256xf32> -> vector<16x256xf32>
    %210 = arith.addf %208, %209 : vector<16x256xf32>
    %211 = vector.extract_strided_slice %210 {offsets = [0, 0], sizes = [16, 192], strides = [1, 1]} : vector<16x256xf32> to vector<16x192xf32>
    %212 = arith.negf %211 : vector<16x192xf32>
    %213 = math.exp %212 : vector<16x192xf32>
    %cst_99 = arith.constant 1.000000e+00 : f32
    %214 = vector.broadcast %cst_99 : f32 to vector<16x192xf32>
    %215 = arith.addf %214, %213 : vector<16x192xf32>
    %216 = arith.divf %214, %215 : vector<16x192xf32>
    %217 = vector.extract_strided_slice %216 {offsets = [0, 0], sizes = [16, 64], strides = [1, 1]} : vector<16x192xf32> to vector<16x64xf32>
    %218 = vector.extract_strided_slice %216 {offsets = [0, 64], sizes = [16, 64], strides = [1, 1]} : vector<16x192xf32> to vector<16x64xf32>
    %219 = vector.extract_strided_slice %216 {offsets = [0, 128], sizes = [16, 64], strides = [1, 1]} : vector<16x192xf32> to vector<16x64xf32>
    %220 = vector.extract_strided_slice %210 {offsets = [0, 192], sizes = [16, 64], strides = [1, 1]} : vector<16x256xf32> to vector<16x64xf32>
    %221 = math.tanh %220 : vector<16x64xf32>
    %222 = arith.mulf %218, %199 : vector<16x64xf32>
    %223 = arith.mulf %217, %221 : vector<16x64xf32>
    %224 = arith.addf %222, %223 : vector<16x64xf32>
    %225 = math.tanh %224 : vector<16x64xf32>
    %226 = arith.mulf %219, %225 : vector<16x64xf32>
    %227 = arith.index_cast %c4_i32 : i32 to index
    %c0_100 = arith.constant 0 : index
    %c0_101 = arith.constant 0 : index
    %228 = vector.load %arg12[%227, %c0_100, %c0_101] : memref<8x16x64xf32, #tpu.memory_space<vmem>>, vector<1x16x64xf32>
    %229 = vector.shape_cast %228 : vector<1x16x64xf32> to vector<16x64xf32>
    %230 = vector.shape_cast %226 : vector<16x64xf32> to vector<1x16x64xf32>
    tpu.vector_store %arg12[%227, %c0_100, %c0_101], %230 {strides = array<i32>} : memref<8x16x64xf32, #tpu.memory_space<vmem>>, vector<1x16x64xf32>,
    %c5_i32 = arith.constant 5 : i32
    %231 = arith.index_cast %c5_i32 : i32 to index
    %c0_102 = arith.constant 0 : index
    %c0_103 = arith.constant 0 : index
    %232 = vector.load %arg11[%231, %c0_102, %c0_103] : memref<8x16x256xf32, #tpu.memory_space<vmem>>, vector<1x16x256xf32>
    %233 = vector.shape_cast %232 : vector<1x16x256xf32> to vector<16x256xf32>
    %cst_104 = arith.constant dense<0.000000e+00> : vector<16x256xf32>
    %234 = tpu.matmul %226, %103, %cst_104 {dimension_numbers = #tpu.dot_dimension_numbers<[1], [0], [0], [1], [0, 0, 1, 1], [], []>} : vector<16x64xf32>, vector<64x256xf32>, vector<16x256xf32> -> vector<16x256xf32>
    %235 = arith.addf %233, %234 : vector<16x256xf32>
    %236 = vector.extract_strided_slice %235 {offsets = [0, 0], sizes = [16, 192], strides = [1, 1]} : vector<16x256xf32> to vector<16x192xf32>
    %237 = arith.negf %236 : vector<16x192xf32>
    %238 = math.exp %237 : vector<16x192xf32>
    %cst_105 = arith.constant 1.000000e+00 : f32
    %239 = vector.broadcast %cst_105 : f32 to vector<16x192xf32>
    %240 = arith.addf %239, %238 : vector<16x192xf32>
    %241 = arith.divf %239, %240 : vector<16x192xf32>
    %242 = vector.extract_strided_slice %241 {offsets = [0, 0], sizes = [16, 64], strides = [1, 1]} : vector<16x192xf32> to vector<16x64xf32>
    %243 = vector.extract_strided_slice %241 {offsets = [0, 64], sizes = [16, 64], strides = [1, 1]} : vector<16x192xf32> to vector<16x64xf32>
    %244 = vector.extract_strided_slice %241 {offsets = [0, 128], sizes = [16, 64], strides = [1, 1]} : vector<16x192xf32> to vector<16x64xf32>
    %245 = vector.extract_strided_slice %235 {offsets = [0, 192], sizes = [16, 64], strides = [1, 1]} : vector<16x256xf32> to vector<16x64xf32>
    %246 = math.tanh %245 : vector<16x64xf32>
    %247 = arith.mulf %243, %224 : vector<16x64xf32>
    %248 = arith.mulf %242, %246 : vector<16x64xf32>
    %249 = arith.addf %247, %248 : vector<16x64xf32>
    %250 = math.tanh %249 : vector<16x64xf32>
    %251 = arith.mulf %244, %250 : vector<16x64xf32>
    %252 = arith.index_cast %c5_i32 : i32 to index
    %c0_106 = arith.constant 0 : index
    %c0_107 = arith.constant 0 : index
    %253 = vector.load %arg12[%252, %c0_106, %c0_107] : memref<8x16x64xf32, #tpu.memory_space<vmem>>, vector<1x16x64xf32>
    %254 = vector.shape_cast %253 : vector<1x16x64xf32> to vector<16x64xf32>
    %255 = vector.shape_cast %251 : vector<16x64xf32> to vector<1x16x64xf32>
    tpu.vector_store %arg12[%252, %c0_106, %c0_107], %255 {strides = array<i32>} : memref<8x16x64xf32, #tpu.memory_space<vmem>>, vector<1x16x64xf32>,
    %c6_i32 = arith.constant 6 : i32
    %256 = arith.index_cast %c6_i32 : i32 to index
    %c0_108 = arith.constant 0 : index
    %c0_109 = arith.constant 0 : index
    %257 = vector.load %arg11[%256, %c0_108, %c0_109] : memref<8x16x256xf32, #tpu.memory_space<vmem>>, vector<1x16x256xf32>
    %258 = vector.shape_cast %257 : vector<1x16x256xf32> to vector<16x256xf32>
    %cst_110 = arith.constant dense<0.000000e+00> : vector<16x256xf32>
    %259 = tpu.matmul %251, %103, %cst_110 {dimension_numbers = #tpu.dot_dimension_numbers<[1], [0], [0], [1], [0, 0, 1, 1], [], []>} : vector<16x64xf32>, vector<64x256xf32>, vector<16x256xf32> -> vector<16x256xf32>
    %260 = arith.addf %258, %259 : vector<16x256xf32>
    %261 = vector.extract_strided_slice %260 {offsets = [0, 0], sizes = [16, 192], strides = [1, 1]} : vector<16x256xf32> to vector<16x192xf32>
    %262 = arith.negf %261 : vector<16x192xf32>
    %263 = math.exp %262 : vector<16x192xf32>
    %cst_111 = arith.constant 1.000000e+00 : f32
    %264 = vector.broadcast %cst_111 : f32 to vector<16x192xf32>
    %265 = arith.addf %264, %263 : vector<16x192xf32>
    %266 = arith.divf %264, %265 : vector<16x192xf32>
    %267 = vector.extract_strided_slice %266 {offsets = [0, 0], sizes = [16, 64], strides = [1, 1]} : vector<16x192xf32> to vector<16x64xf32>
    %268 = vector.extract_strided_slice %266 {offsets = [0, 64], sizes = [16, 64], strides = [1, 1]} : vector<16x192xf32> to vector<16x64xf32>
    %269 = vector.extract_strided_slice %266 {offsets = [0, 128], sizes = [16, 64], strides = [1, 1]} : vector<16x192xf32> to vector<16x64xf32>
    %270 = vector.extract_strided_slice %260 {offsets = [0, 192], sizes = [16, 64], strides = [1, 1]} : vector<16x256xf32> to vector<16x64xf32>
    %271 = math.tanh %270 : vector<16x64xf32>
    %272 = arith.mulf %268, %249 : vector<16x64xf32>
    %273 = arith.mulf %267, %271 : vector<16x64xf32>
    %274 = arith.addf %272, %273 : vector<16x64xf32>
    %275 = math.tanh %274 : vector<16x64xf32>
    %276 = arith.mulf %269, %275 : vector<16x64xf32>
    %277 = arith.index_cast %c6_i32 : i32 to index
    %c0_112 = arith.constant 0 : index
    %c0_113 = arith.constant 0 : index
    %278 = vector.load %arg12[%277, %c0_112, %c0_113] : memref<8x16x64xf32, #tpu.memory_space<vmem>>, vector<1x16x64xf32>
    %279 = vector.shape_cast %278 : vector<1x16x64xf32> to vector<16x64xf32>
    %280 = vector.shape_cast %276 : vector<16x64xf32> to vector<1x16x64xf32>
    tpu.vector_store %arg12[%277, %c0_112, %c0_113], %280 {strides = array<i32>} : memref<8x16x64xf32, #tpu.memory_space<vmem>>, vector<1x16x64xf32>,
    %c7_i32 = arith.constant 7 : i32
    %281 = arith.index_cast %c7_i32 : i32 to index
    %c0_114 = arith.constant 0 : index
    %c0_115 = arith.constant 0 : index
    %282 = vector.load %arg11[%281, %c0_114, %c0_115] : memref<8x16x256xf32, #tpu.memory_space<vmem>>, vector<1x16x256xf32>
    %283 = vector.shape_cast %282 : vector<1x16x256xf32> to vector<16x256xf32>
    %cst_116 = arith.constant dense<0.000000e+00> : vector<16x256xf32>
    %284 = tpu.matmul %276, %103, %cst_116 {dimension_numbers = #tpu.dot_dimension_numbers<[1], [0], [0], [1], [0, 0, 1, 1], [], []>} : vector<16x64xf32>, vector<64x256xf32>, vector<16x256xf32> -> vector<16x256xf32>
    %285 = arith.addf %283, %284 : vector<16x256xf32>
    %286 = vector.extract_strided_slice %285 {offsets = [0, 0], sizes = [16, 192], strides = [1, 1]} : vector<16x256xf32> to vector<16x192xf32>
    %287 = arith.negf %286 : vector<16x192xf32>
    %288 = math.exp %287 : vector<16x192xf32>
    %cst_117 = arith.constant 1.000000e+00 : f32
    %289 = vector.broadcast %cst_117 : f32 to vector<16x192xf32>
    %290 = arith.addf %289, %288 : vector<16x192xf32>
    %291 = arith.divf %289, %290 : vector<16x192xf32>
    %292 = vector.extract_strided_slice %291 {offsets = [0, 0], sizes = [16, 64], strides = [1, 1]} : vector<16x192xf32> to vector<16x64xf32>
    %293 = vector.extract_strided_slice %291 {offsets = [0, 64], sizes = [16, 64], strides = [1, 1]} : vector<16x192xf32> to vector<16x64xf32>
    %294 = vector.extract_strided_slice %291 {offsets = [0, 128], sizes = [16, 64], strides = [1, 1]} : vector<16x192xf32> to vector<16x64xf32>
    %295 = vector.extract_strided_slice %285 {offsets = [0, 192], sizes = [16, 64], strides = [1, 1]} : vector<16x256xf32> to vector<16x64xf32>
    %296 = math.tanh %295 : vector<16x64xf32>
    %297 = arith.mulf %293, %274 : vector<16x64xf32>
    %298 = arith.mulf %292, %296 : vector<16x64xf32>
    %299 = arith.addf %297, %298 : vector<16x64xf32>
    %300 = math.tanh %299 : vector<16x64xf32>
    %301 = arith.mulf %294, %300 : vector<16x64xf32>
    %302 = arith.index_cast %c7_i32 : i32 to index
    %c0_118 = arith.constant 0 : index
    %c0_119 = arith.constant 0 : index
    %303 = vector.load %arg12[%302, %c0_118, %c0_119] : memref<8x16x64xf32, #tpu.memory_space<vmem>>, vector<1x16x64xf32>
    %304 = vector.shape_cast %303 : vector<1x16x64xf32> to vector<16x64xf32>
    %305 = vector.shape_cast %301 : vector<16x64xf32> to vector<1x16x64xf32>
    tpu.vector_store %arg12[%302, %c0_118, %c0_119], %305 {strides = array<i32>} : memref<8x16x64xf32, #tpu.memory_space<vmem>>, vector<1x16x64xf32>,
    %c8_i32 = arith.constant 8 : i32
    %306 = tpu.iota {dimensions = array<i32: 1>} : vector<16x64xi32>
    %c32_i32_120 = arith.constant 32 : i32
    %307 = vector.broadcast %c32_i32_120 : i32 to vector<16x64xi32>
    %308 = arith.cmpi slt, %306, %307 : vector<16x64xi32>
    %c0_121 = arith.constant 0 : index
    %c0_122 = arith.constant 0 : index
    %c0_123 = arith.constant 0 : index
    %309 = vector.load %arg12[%c0_121, %c0_122, %c0_123] : memref<8x16x64xf32, #tpu.memory_space<vmem>>, vector<1x16x64xf32>
    %310 = vector.shape_cast %309 : vector<1x16x64xf32> to vector<16x64xf32>
    %c7_124 = arith.constant 7 : index
    %c0_125 = arith.constant 0 : index
    %c0_126 = arith.constant 0 : index
    %311 = vector.load %arg12[%c7_124, %c0_125, %c0_126] : memref<8x16x64xf32, #tpu.memory_space<vmem>>, vector<1x16x64xf32>
    %312 = vector.shape_cast %311 : vector<1x16x64xf32> to vector<16x64xf32>
    %313 = arith.select %308, %310, %312 : vector<16x64xi1>, vector<16x64xf32>
    %c0_127 = arith.constant 0 : index
    %c0_128 = arith.constant 0 : index
    %c0_129 = arith.constant 0 : index
    %314 = vector.load %arg12[%c0_127, %c0_128, %c0_129] : memref<8x16x64xf32, #tpu.memory_space<vmem>>, vector<1x16x64xf32>
    %315 = vector.shape_cast %314 : vector<1x16x64xf32> to vector<16x64xf32>
    %316 = vector.shape_cast %313 : vector<16x64xf32> to vector<1x16x64xf32>
    tpu.vector_store %arg12[%c0_127, %c0_128, %c0_129], %316 {strides = array<i32>} : memref<8x16x64xf32, #tpu.memory_space<vmem>>, vector<1x16x64xf32>,
    %317 = arith.select %308, %312, %310 : vector<16x64xi1>, vector<16x64xf32>
    %c7_130 = arith.constant 7 : index
    %c0_131 = arith.constant 0 : index
    %c0_132 = arith.constant 0 : index
    %318 = vector.load %arg12[%c7_130, %c0_131, %c0_132] : memref<8x16x64xf32, #tpu.memory_space<vmem>>, vector<1x16x64xf32>
    %319 = vector.shape_cast %318 : vector<1x16x64xf32> to vector<16x64xf32>
    %320 = vector.shape_cast %317 : vector<16x64xf32> to vector<1x16x64xf32>
    tpu.vector_store %arg12[%c7_130, %c0_131, %c0_132], %320 {strides = array<i32>} : memref<8x16x64xf32, #tpu.memory_space<vmem>>, vector<1x16x64xf32>,
    %c1_133 = arith.constant 1 : index
    %c0_134 = arith.constant 0 : index
    %c0_135 = arith.constant 0 : index
    %321 = vector.load %arg12[%c1_133, %c0_134, %c0_135] : memref<8x16x64xf32, #tpu.memory_space<vmem>>, vector<1x16x64xf32>
    %322 = vector.shape_cast %321 : vector<1x16x64xf32> to vector<16x64xf32>
    %c6_136 = arith.constant 6 : index
    %c0_137 = arith.constant 0 : index
    %c0_138 = arith.constant 0 : index
    %323 = vector.load %arg12[%c6_136, %c0_137, %c0_138] : memref<8x16x64xf32, #tpu.memory_space<vmem>>, vector<1x16x64xf32>
    %324 = vector.shape_cast %323 : vector<1x16x64xf32> to vector<16x64xf32>
    %325 = arith.select %308, %322, %324 : vector<16x64xi1>, vector<16x64xf32>
    %c1_139 = arith.constant 1 : index
    %c0_140 = arith.constant 0 : index
    %c0_141 = arith.constant 0 : index
    %326 = vector.load %arg12[%c1_139, %c0_140, %c0_141] : memref<8x16x64xf32, #tpu.memory_space<vmem>>, vector<1x16x64xf32>
    %327 = vector.shape_cast %326 : vector<1x16x64xf32> to vector<16x64xf32>
    %328 = vector.shape_cast %325 : vector<16x64xf32> to vector<1x16x64xf32>
    tpu.vector_store %arg12[%c1_139, %c0_140, %c0_141], %328 {strides = array<i32>} : memref<8x16x64xf32, #tpu.memory_space<vmem>>, vector<1x16x64xf32>,
    %329 = arith.select %308, %324, %322 : vector<16x64xi1>, vector<16x64xf32>
    %c6_142 = arith.constant 6 : index
    %c0_143 = arith.constant 0 : index
    %c0_144 = arith.constant 0 : index
    %330 = vector.load %arg12[%c6_142, %c0_143, %c0_144] : memref<8x16x64xf32, #tpu.memory_space<vmem>>, vector<1x16x64xf32>
    %331 = vector.shape_cast %330 : vector<1x16x64xf32> to vector<16x64xf32>
    %332 = vector.shape_cast %329 : vector<16x64xf32> to vector<1x16x64xf32>
    tpu.vector_store %arg12[%c6_142, %c0_143, %c0_144], %332 {strides = array<i32>} : memref<8x16x64xf32, #tpu.memory_space<vmem>>, vector<1x16x64xf32>,
    %c2_145 = arith.constant 2 : index
    %c0_146 = arith.constant 0 : index
    %c0_147 = arith.constant 0 : index
    %333 = vector.load %arg12[%c2_145, %c0_146, %c0_147] : memref<8x16x64xf32, #tpu.memory_space<vmem>>, vector<1x16x64xf32>
    %334 = vector.shape_cast %333 : vector<1x16x64xf32> to vector<16x64xf32>
    %c5_148 = arith.constant 5 : index
    %c0_149 = arith.constant 0 : index
    %c0_150 = arith.constant 0 : index
    %335 = vector.load %arg12[%c5_148, %c0_149, %c0_150] : memref<8x16x64xf32, #tpu.memory_space<vmem>>, vector<1x16x64xf32>
    %336 = vector.shape_cast %335 : vector<1x16x64xf32> to vector<16x64xf32>
    %337 = arith.select %308, %334, %336 : vector<16x64xi1>, vector<16x64xf32>
    %c2_151 = arith.constant 2 : index
    %c0_152 = arith.constant 0 : index
    %c0_153 = arith.constant 0 : index
    %338 = vector.load %arg12[%c2_151, %c0_152, %c0_153] : memref<8x16x64xf32, #tpu.memory_space<vmem>>, vector<1x16x64xf32>
    %339 = vector.shape_cast %338 : vector<1x16x64xf32> to vector<16x64xf32>
    %340 = vector.shape_cast %337 : vector<16x64xf32> to vector<1x16x64xf32>
    tpu.vector_store %arg12[%c2_151, %c0_152, %c0_153], %340 {strides = array<i32>} : memref<8x16x64xf32, #tpu.memory_space<vmem>>, vector<1x16x64xf32>,
    %341 = arith.select %308, %336, %334 : vector<16x64xi1>, vector<16x64xf32>
    %c5_154 = arith.constant 5 : index
    %c0_155 = arith.constant 0 : index
    %c0_156 = arith.constant 0 : index
    %342 = vector.load %arg12[%c5_154, %c0_155, %c0_156] : memref<8x16x64xf32, #tpu.memory_space<vmem>>, vector<1x16x64xf32>
    %343 = vector.shape_cast %342 : vector<1x16x64xf32> to vector<16x64xf32>
    %344 = vector.shape_cast %341 : vector<16x64xf32> to vector<1x16x64xf32>
    tpu.vector_store %arg12[%c5_154, %c0_155, %c0_156], %344 {strides = array<i32>} : memref<8x16x64xf32, #tpu.memory_space<vmem>>, vector<1x16x64xf32>,
    %c3_157 = arith.constant 3 : index
    %c0_158 = arith.constant 0 : index
    %c0_159 = arith.constant 0 : index
    %345 = vector.load %arg12[%c3_157, %c0_158, %c0_159] : memref<8x16x64xf32, #tpu.memory_space<vmem>>, vector<1x16x64xf32>
    %346 = vector.shape_cast %345 : vector<1x16x64xf32> to vector<16x64xf32>
    %c4_160 = arith.constant 4 : index
    %c0_161 = arith.constant 0 : index
    %c0_162 = arith.constant 0 : index
    %347 = vector.load %arg12[%c4_160, %c0_161, %c0_162] : memref<8x16x64xf32, #tpu.memory_space<vmem>>, vector<1x16x64xf32>
    %348 = vector.shape_cast %347 : vector<1x16x64xf32> to vector<16x64xf32>
    %349 = arith.select %308, %346, %348 : vector<16x64xi1>, vector<16x64xf32>
    %c3_163 = arith.constant 3 : index
    %c0_164 = arith.constant 0 : index
    %c0_165 = arith.constant 0 : index
    %350 = vector.load %arg12[%c3_163, %c0_164, %c0_165] : memref<8x16x64xf32, #tpu.memory_space<vmem>>, vector<1x16x64xf32>
    %351 = vector.shape_cast %350 : vector<1x16x64xf32> to vector<16x64xf32>
    %352 = vector.shape_cast %349 : vector<16x64xf32> to vector<1x16x64xf32>
    tpu.vector_store %arg12[%c3_163, %c0_164, %c0_165], %352 {strides = array<i32>} : memref<8x16x64xf32, #tpu.memory_space<vmem>>, vector<1x16x64xf32>,
    %353 = arith.select %308, %348, %346 : vector<16x64xi1>, vector<16x64xf32>
    %c4_166 = arith.constant 4 : index
    %c0_167 = arith.constant 0 : index
    %c0_168 = arith.constant 0 : index
    %354 = vector.load %arg12[%c4_166, %c0_167, %c0_168] : memref<8x16x64xf32, #tpu.memory_space<vmem>>, vector<1x16x64xf32>
    %355 = vector.shape_cast %354 : vector<1x16x64xf32> to vector<16x64xf32>
    %356 = vector.shape_cast %353 : vector<16x64xf32> to vector<1x16x64xf32>
    tpu.vector_store %arg12[%c4_166, %c0_167, %c0_168], %356 {strides = array<i32>} : memref<8x16x64xf32, #tpu.memory_space<vmem>>, vector<1x16x64xf32>,
    %c0_169 = arith.constant 0 : index
    %c0_170 = arith.constant 0 : index
    %c0_171 = arith.constant 0 : index
    %357 = vector.load %arg12[%c0_169, %c0_170, %c0_171] : memref<8x16x64xf32, #tpu.memory_space<vmem>>, vector<8x16x64xf32>
    %358 = vector.shape_cast %357 : vector<8x16x64xf32> to vector<128x64xf32>
    %c0_172 = arith.constant 0 : index
    %c0_173 = arith.constant 0 : index
    %359 = vector.load %arg8[%c0_172, %c0_173] : memref<64x32xf32, #tpu.memory_space<vmem>>, vector<64x32xf32>
    %cst_174 = arith.constant dense<0.000000e+00> : vector<128x32xf32>
    %360 = tpu.matmul %358, %359, %cst_174 {dimension_numbers = #tpu.dot_dimension_numbers<[1], [0], [0], [1], [0, 0, 1, 1], [], []>} : vector<128x64xf32>, vector<64x32xf32>, vector<128x32xf32> -> vector<128x32xf32>
    %c0_175 = arith.constant 0 : index
    %c0_176 = arith.constant 0 : index
    %361 = vector.load %arg9[%c0_175, %c0_176] : memref<1x32xf32, #tpu.memory_space<vmem>>, vector<1x32xf32>
    %362 = vector.broadcast %361 : vector<1x32xf32> to vector<128x32xf32>
    %363 = arith.addf %360, %362 : vector<128x32xf32>
    %364 = vector.shape_cast %363 : vector<128x32xf32> to vector<8x16x32xf32>
    %c0_177 = arith.constant 0 : index
    %c0_178 = arith.constant 0 : index
    %c0_179 = arith.constant 0 : index
    %365 = vector.load %arg1[%c0_177, %c0_178, %c0_179] : memref<8x16x32xf32, #tpu.memory_space<vmem>>, vector<8x16x32xf32>
    %366 = arith.addf %364, %365 : vector<8x16x32xf32>
    %c0_180 = arith.constant 0 : index
    %c0_181 = arith.constant 0 : index
    %c0_182 = arith.constant 0 : index
    %367 = vector.load %arg10[%c0_180, %c0_181, %c0_182] : memref<8x16x32xf32, #tpu.memory_space<vmem>>, vector<8x16x32xf32>
    tpu.vector_store %arg10[%c0_180, %c0_181, %c0_182], %366 {strides = array<i32>} : memref<8x16x32xf32, #tpu.memory_space<vmem>>, vector<8x16x32xf32>,
    return
  }
  func.func @transform_0(%arg0: i32) -> (i32, i32, i32) {
    %c0_i32 = arith.constant 0 : i32
    %c0_i32_0 = arith.constant 0 : i32
    %c0_i32_1 = arith.constant 0 : i32
    return %c0_i32, %arg0, %c0_i32_0 : i32, i32, i32
  }
  func.func @transform_1(%arg0: i32) -> (i32, i32) {
    %c0_i32 = arith.constant 0 : i32
    %c0_i32_0 = arith.constant 0 : i32
    %c0_i32_1 = arith.constant 0 : i32
    return %c0_i32, %c0_i32_0 : i32, i32
  }
  func.func @transform_2(%arg0: i32) -> (i32, i32) {
    %c0_i32 = arith.constant 0 : i32
    %c0_i32_0 = arith.constant 0 : i32
    %c0_i32_1 = arith.constant 0 : i32
    return %c0_i32, %c0_i32_0 : i32, i32
  }
  func.func @transform_3(%arg0: i32) -> (i32, i32) {
    %c0_i32 = arith.constant 0 : i32
    %c0_i32_0 = arith.constant 0 : i32
    %c0_i32_1 = arith.constant 0 : i32
    return %c0_i32, %c0_i32_0 : i32, i32
  }
  func.func @transform_4(%arg0: i32) -> (i32, i32) {
    %c0_i32 = arith.constant 0 : i32
    %c0_i32_0 = arith.constant 0 : i32
    %c0_i32_1 = arith.constant 0 : i32
    return %c0_i32, %c0_i32_0 : i32, i32
  }
  func.func @transform_5(%arg0: i32) -> (i32, i32) {
    %c0_i32 = arith.constant 0 : i32
    %c0_i32_0 = arith.constant 0 : i32
    %c0_i32_1 = arith.constant 0 : i32
    return %c0_i32, %c0_i32_0 : i32, i32
  }
  func.func @transform_6(%arg0: i32) -> (i32, i32) {
    %c0_i32 = arith.constant 0 : i32
    %c0_i32_0 = arith.constant 0 : i32
    %c0_i32_1 = arith.constant 0 : i32
    return %c0_i32, %c0_i32_0 : i32, i32
  }
  func.func @transform_7(%arg0: i32) -> (i32, i32) {
    %c0_i32 = arith.constant 0 : i32
    %c0_i32_0 = arith.constant 0 : i32
    %c0_i32_1 = arith.constant 0 : i32
    return %c0_i32, %c0_i32_0 : i32, i32
  }
  func.func @transform_8(%arg0: i32) -> (i32, i32) {
    %c0_i32 = arith.constant 0 : i32
    %c0_i32_0 = arith.constant 0 : i32
    %c0_i32_1 = arith.constant 0 : i32
    return %c0_i32, %c0_i32_0 : i32, i32
  }
  func.func @transform_9(%arg0: i32) -> (i32, i32, i32) {
    %c0_i32 = arith.constant 0 : i32
    %c0_i32_0 = arith.constant 0 : i32
    %c0_i32_1 = arith.constant 0 : i32
    return %c0_i32, %arg0, %c0_i32_0 : i32, i32, i32
  }
}

</mosaic_0001>

<bundles_post_ra>
// kernel: rnn_module_forward.1
= control target key start
LH: loop header
LB: loop body
LE: loop exit
PB: predicated region body
PF: predicated region fallthrough
CT: control target
= control target key end

     0   :  { %vm52_vm0 = vcmask 261120   ;;  %vm790_vm3 = vcmask 523264   ;;  %s4132_s3 = inlined_call_operand.vmem [shape: f32[32,32], index: 3, kind: input, shape index: {}]   ;;  %s4133_s0 = inlined_call_operand.vmem [shape: f32[8,16,32], index: 0, kind: input, shape index: {}]   ;;  %s4134_s4 = inlined_call_operand.vmem [shape: f32[32,256], index: 4, kind: input, shape index: {}]   ;;  %s4135_s5 = inlined_call_operand.vmem [shape: f32[64,256], index: 5, kind: input, shape index: {}]   ;;  %s4136_s1 = inlined_call_operand.vmem [shape: f32[1,32], index: 1, kind: input, shape index: {}]   ;;  %s4137_s2 = inlined_call_operand.vmem [shape: f32[1,32], index: 2, kind: input, shape index: {}]   ;;  %s4138_s6 = inlined_call_operand.vmem [shape: f32[1,256], index: 6, kind: input, shape index: {}]   ;;  %s4139_s7 = inlined_call_operand.vmem [shape: f32[64,32], index: 7, kind: input, shape index: {}]   ;;  %s4140_s8 = inlined_call_operand.vmem [shape: f32[1,32], index: 8, kind: input, shape index: {}]   ;;  %s4141_s9 = inlined_call_operand.vmem [shape: f32[8,16,32], index: 9, kind: output, shape index: {}]  }
   0x1   :  { %v48_v0 = vld [vmem:[%s4132_s3] sm:$0xff]  ;;  %v49_v1 = vld [vmem:[%s4132_s3 + $0x8] sm:$0xff]  ;;  %v50_v2 = vld [vmem:[%s4132_s3 + $0x10] sm:$0xff] }
   0x2   :  { %v2523_v3 = vpack.c.bf16 %v49_v1, %v48_v0  ;;  %v51_v4 = vld [vmem:[%s4132_s3 + $0x18] sm:$0xff]  ;;  %v32_v5 = vld [vmem:[%s4133_s0] sm:$0xff]  ;;  %v34_v6 = vld [vmem:[%s4133_s0 + $0x10] sm:$0xff] }
   0x3   :  { %v2527_v7 = vpack.c.bf16 %v51_v4, %v50_v2  ;;  %v36_v8 = vld [vmem:[%s4133_s0 + $0x20] sm:$0xff]  ;;  %v38_v9 = vld [vmem:[%s4133_s0 + $0x30] sm:$0xff]  ;;  %v53_v10 = vsel %vm52_vm0, %v32_v5, 0.0  ;;  %v54_v11 = vsel %vm52_vm0, %v34_v6, 0.0  ;;  %v33_v16 = vld [vmem:[%s4133_s0 + $0x8] sm:$0xff] }
   0x4   :  { %2524 = vmatprep.subr.bf16.mxu0 %v2523_v3  ;;  %v40_v12 = vld [vmem:[%s4133_s0 + $0x40] sm:$0xff]  ;;  %v55_v13 = vadd.f32 %v54_v11, %v53_v10  ;;  %v56_v14 = vsel %vm52_vm0, %v36_v8, 0.0  ;;  %2532 = vmatprep.subr.bf16.mxu1 %v2523_v3  ;;  %v58_v15 = vsel %vm52_vm0, %v38_v9, 0.0  ;;  %v35_v17 = vld [vmem:[%s4133_s0 + $0x18] sm:$0xff]  ;;  %v37_v18 = vld [vmem:[%s4133_s0 + $0x28] sm:$0xff]  ;;  %v68_v22 = vsel %vm52_vm0, %v33_v16, 0.0 }
   0x5   :  { %2526 = vmatpush3.bf16.msra.mxu0 %v2523_v3  ;;  %2534 = vmatpush3.bf16.msra.mxu1 %v2523_v3  ;;  %v42_v19 = vld [vmem:[%s4133_s0 + $0x50] sm:$0xff]  ;;  %v39_v21 = vld [vmem:[%s4133_s0 + $0x38] sm:$0xff]  ;;  %v69_v23 = vsel %vm52_vm0, %v35_v17, 0.0  ;;  %v71_v24 = vsel %vm52_vm0, %v37_v18, 0.0  ;;  %v60_v25 = vsel %vm52_vm0, %v40_v12, 0.0  ;;  %v41_v26 = vld [vmem:[%s4133_s0 + $0x48] sm:$0xff] }
   0x6   :  { %2528 = vmatprep.subr.bf16.mxu0 %v2527_v7  ;;  %v57_v20 = vadd.f32 %v56_v14, %v55_v13  ;;  %2536 = vmatprep.subr.bf16.mxu1 %v2527_v7  ;;  %v70_v27 = vadd.f32 %v69_v23, %v68_v22  ;;  %v44_v28 = vld [vmem:[%s4133_s0 + $0x60] sm:$0xff]  ;;  %v73_v30 = vsel %vm52_vm0, %v39_v21, 0.0  ;;  %v62_v31 = vsel %vm52_vm0, %v42_v19, 0.0  ;;  %v43_v32 = vld [vmem:[%s4133_s0 + $0x58] sm:$0xff]  ;;  %v46_v34 = vld [vmem:[%s4133_s0 + $0x70] sm:$0xff] }
   0x7   :  { %v75_v36 = vsel %vm52_vm0, %v41_v26, 0.0  ;;  %v64_v37 = vsel %vm52_vm0, %v44_v28, 0.0  ;;  %v45_v38 = vld [vmem:[%s4133_s0 + $0x68] sm:$0xff]  ;;  %v77_v41 = vsel %vm52_vm0, %v43_v32, 0.0  ;;  %v66_v42 = vsel %vm52_vm0, %v46_v34, 0.0  ;;  %v47_v43 = vld [vmem:[%s4133_s0 + $0x78] sm:$0xff] }
   0x8   :  { %v59_v29 = vadd.f32 %v58_v15, %v57_v20  ;;  %v72_v33 = vadd.f32 %v71_v24, %v70_v27  ;;  %v79_v46 = vsel %vm52_vm0, %v45_v38, 0.0  ;;  %v81_v49 = vsel %vm52_vm0, %v47_v43, 0.0 }
   0x9   :  { %2530 = vmatpush3.bf16.msra.mxu0 %v2527_v7  ;;  %2538 = vmatpush3.bf16.msra.mxu1 %v2527_v7 }
   0xa   :  { %v61_v35 = vadd.f32 %v60_v25, %v59_v29  ;;  %v74_v39 = vadd.f32 %v73_v30, %v72_v33 }
   0xc   :  { %v63_v40 = vadd.f32 %v62_v31, %v61_v35  ;;  %v76_v44 = vadd.f32 %v75_v36, %v74_v39 }
   0xe   :  { %v65_v45 = vadd.f32 %v64_v37, %v63_v40  ;;  %v78_v47 = vadd.f32 %v77_v41, %v76_v44 }
  0x10   :  { %v67_v48 = vadd.f32 %v66_v42, %v65_v45  ;;  %v80_v50 = vadd.f32 %v79_v46, %v78_v47 }
  0x12   :  { %2469 = vmatprep.mubr.msk.f32.mxu0 %vm52_vm0, %v67_v48  ;;  %v82_v51 = vadd.f32 %v81_v49, %v80_v50 }
  0x14   :  { %2470 = vmatmul.mubr.msk.f32.vlgmr.msra.gmra.mrb[0].mxu0 %vm52_vm0, %v82_v51 }
  0xe7   :  { %v2471_v52 = vpop.f32.mrb[0].mxu0 }
  0xe8   :  { %v155_v53 = vpop.f32.mrb[1].mxu0  ;;  %v165_v55 = vmul.f32 0.125, %v2471_v52 }
  0xe9   :  { %v164_v54 = vmul.f32 0.125, %v155_v53 }
  0xea   :  { %v3039_v0 = vsub.f32 %v33_v16, %v165_v55  ;;  %v3041_v1 = vsub.f32 %v35_v17, %v165_v55  ;;  %v3043_v2 = vsub.f32 %v37_v18, %v165_v55  ;;  %v3056_v11 = vsub.f32 %v39_v21, %v165_v55 }
  0xeb   :  { %v3023_v56 = vsub.f32 %v32_v5, %v164_v54  ;;  %v3025_v57 = vsub.f32 %v34_v6, %v164_v54  ;;  %v3027_v58 = vsub.f32 %v36_v8, %v164_v54  ;;  %v3029_v59 = vsub.f32 %v38_v9, %v164_v54 }
  0xec   :  { %v3031_v60 = vsub.f32 %v40_v12, %v164_v54  ;;  %v3045_v3 = vsub.f32 %v42_v19, %v164_v54  ;;  %v3051_v7 = vsub.f32 %v44_v28, %v164_v54  ;;  %v3058_v12 = vsub.f32 %v46_v34, %v164_v54  ;;  %v378_v54 = vld [vmem:[%s4134_s4 + $0x8] sm:$0xff] }
  0xed   :  { %v182_v61 = vmul.f32 %v3023_v56, %v3023_v56  ;;  %v184_v62 = vmul.f32 %v3025_v57, %v3025_v57  ;;  %v186_v63 = vmul.f32 %v3027_v58, %v3027_v58  ;;  %v188_v4 = vmul.f32 %v3029_v59, %v3029_v59 }
  0xee   :  { %v190_v9 = vmul.f32 %v3031_v60, %v3031_v60  ;;  %v183_v14 = vmul.f32 %v3039_v0, %v3039_v0  ;;  %v185_v15 = vmul.f32 %v3041_v1, %v3041_v1  ;;  %v192_v16 = vmul.f32 %v3045_v3, %v3045_v3 }
  0xef   :  { %v198_v5 = vsel %vm52_vm0, %v182_v61, 0.0  ;;  %v199_v6 = vsel %vm52_vm0, %v184_v62, 0.0  ;;  %v201_v10 = vsel %vm52_vm0, %v186_v63, 0.0  ;;  %v203_v17 = vsel %vm52_vm0, %v188_v4, 0.0  ;;  %v377_v61 = vld [vmem:[%s4134_s4] sm:$0xff]  ;;  %v379_v4 = vld [vmem:[%s4134_s4 + $0x10] sm:$0xff] }
  0xf0   :  { %v200_v8 = vadd.f32 %v199_v6, %v198_v5  ;;  %v3067_v18 = vsub.f32 %v41_v26, %v165_v55  ;;  %v187_v19 = vmul.f32 %v3043_v2, %v3043_v2  ;;  %v194_v20 = vmul.f32 %v3051_v7, %v3051_v7  ;;  %v382_v5 = vld [vmem:[%s4134_s4 + $0x28] sm:$0xff]  ;;  %v384_v6 = vld [vmem:[%s4134_s4 + $0x38] sm:$0xff] }
  0xf1   :  { %v213_v22 = vsel %vm52_vm0, %v183_v14, 0.0  ;;  %v205_v23 = vsel %vm52_vm0, %v190_v9, 0.0  ;;  %v3075_v24 = vsub.f32 %v43_v32, %v165_v55  ;;  %v189_v25 = vmul.f32 %v3056_v11, %v3056_v11  ;;  %v771_v14 = vld [vmem:[%s4135_s5 + $0x8] sm:$0xff] }
  0xf2   :  { %v202_v13 = vadd.f32 %v201_v10, %v200_v8  ;;  %v214_v27 = vsel %vm52_vm0, %v185_v15, 0.0  ;;  %v196_v26 = vmul.f32 %v3058_v12, %v3058_v12  ;;  %v207_v30 = vsel %vm52_vm0, %v192_v16, 0.0  ;;  %v381_v10 = vld [vmem:[%s4134_s4 + $0x20] sm:$0xff]  ;;  %v773_v15 = vld [vmem:[%s4135_s5 + $0x18] sm:$0xff] }
  0xf3   :  { %v215_v29 = vadd.f32 %v214_v27, %v213_v22  ;;  %v3083_v31 = vsub.f32 %v45_v38, %v165_v55  ;;  %v191_v33 = vmul.f32 %v3067_v18, %v3067_v18  ;;  %v216_v32 = vsel %vm52_vm0, %v187_v19, 0.0 }
  0xf4   :  { %v204_v21 = vadd.f32 %v203_v17, %v202_v13  ;;  %v209_v36 = vsel %vm52_vm0, %v194_v20, 0.0  ;;  %v3089_v37 = vsub.f32 %v47_v43, %v165_v55  ;;  %v193_v39 = vmul.f32 %v3075_v24, %v3075_v24  ;;  %v380_v55 = vld [vmem:[%s4134_s4 + $0x18] sm:$0xff]  ;;  %v383_v13 = vld [vmem:[%s4134_s4 + $0x30] sm:$0xff] }
  0xf5   :  { %v217_v35 = vadd.f32 %v216_v32, %v215_v29  ;;  %v218_v40 = vsel %vm52_vm0, %v189_v25, 0.0  ;;  %v211_v38 = vsel %vm52_vm0, %v196_v26, 0.0  ;;  %v195_v44 = vmul.f32 %v3083_v31, %v3083_v31  ;;  %v3146_v26 = vld [vmem:[%s4136_s1] ss:$0 sm:$0xff] }
  0xf6   :  { %v206_v28 = vadd.f32 %v205_v23, %v204_v21  ;;  %v220_v45 = vsel %vm52_vm0, %v191_v33, 0.0  ;;  %v197_v43 = vmul.f32 %v3089_v37, %v3089_v37  ;;  %v222_v48 = vsel %vm52_vm0, %v193_v39, 0.0  ;;  %v772_v33 = vld [vmem:[%s4135_s5 + $0x10] sm:$0xff]  ;;  %v3161_v32 = vld [vmem:[%s4137_s2] ss:$0 sm:$0xff]  ;;  %v775_v39 = vld [vmem:[%s4135_s5 + $0x28] sm:$0xff] }
  0xf7   :  { %v219_v42 = vadd.f32 %v218_v40, %v217_v35  ;;  %v224_v50 = vsel %vm52_vm0, %v195_v44, 0.0  ;;  %v2893_v62 = vmov 0.0   ;;  %v2539_v63 = vpack.c.bf16 %v380_v55, %v378_v54  ;;  %v777_v40 = vld [vmem:[%s4135_s5 + $0x38] sm:$0xff]  ;;  %v783_v54 = vld [vmem:[%s4135_s5 + $0x68] sm:$0xff] }
  0xf8   :  { %v208_v34 = vadd.f32 %v207_v30, %v206_v28  ;;  %v226_v52 = vsel %vm52_vm0, %v197_v43, 0.0  ;;  %509 = vmatprep.mubr.f32.mxu0 %v2893_v62  ;;  %v2541_v8 = vpack.c.bf16 %v379_v4, %v377_v61  ;;  %v2543_v9 = vpack.c.bf16 %v384_v6, %v382_v5  ;;  %v770_v30 = vld [vmem:[%s4135_s5] sm:$0xff]  ;;  %v785_v55 = vld [vmem:[%s4135_s5 + $0x78] sm:$0xff] }
  0xf9   :  { %v221_v47 = vadd.f32 %v220_v45, %v219_v42  ;;  %2691 = vmatprep.subr.bf16.mxu1 %v2539_v63  ;;  %2540 = vmatprep.subr.bf16.mxu0 %v2539_v63  ;;  %v2545_v16 = vpack.c.bf16 %v383_v13, %v381_v10  ;;  %v3137_v17 = vpack.c.bf16 %v773_v15, %v771_v14  ;;  %v782_v14 = vld [vmem:[%s4135_s5 + $0x60] sm:$0xff]  ;;  %v784_v15 = vld [vmem:[%s4135_s5 + $0x70] sm:$0xff] }
  0xfa   :  { %v210_v41 = vadd.f32 %v209_v36, %v208_v34  ;;  %2542 = vmatpush1.bf16.msra.mxu0 %v2541_v8  ;;  %v3236_v6 = vpack.c.bf16 %v785_v55, %v783_v54 }
  0xfb   :  { %v223_v49 = vadd.f32 %v222_v48, %v221_v47  ;;  %2544 = vmatprep.subr.bf16.mxu0 %v2543_v9  ;;  %v779_v48 = vld [vmem:[%s4135_s5 + $0x48] sm:$0xff] }
  0xfc   :  { %v212_v46 = vadd.f32 %v211_v38, %v210_v41  ;;  %v3176_v41 = vpack.c.bf16 %v772_v33, %v770_v30  ;;  %v776_v38 = vld [vmem:[%s4135_s5 + $0x30] sm:$0xff] }
  0xfd   :  { %v225_v51 = vadd.f32 %v224_v50, %v223_v49  ;;  %v781_v49 = vld [vmem:[%s4135_s5 + $0x58] sm:$0xff] }
  0xfe   :  { %2480 = vmatprep.mubr.msk.f32.mxu1 %vm52_vm0, %v212_v46  ;;  %2546 = vmatpush1.bf16.msra.mxu0 %v2545_v16  ;;  %v3190_v46 = vpack.c.bf16 %v777_v40, %v775_v39  ;;  %v3227_v4 = vpack.c.bf16 %v781_v49, %v779_v48 }
  0xff   :  { %v227_v53 = vadd.f32 %v226_v52, %v225_v51  ;;  %2612 = vmatprep.subr.bf16.mxu0 %v3137_v17  ;;  %v780_v52 = vld [vmem:[%s4135_s5 + $0x50] sm:$0xff] }
 0x101   :  { %2481 = vmatmul.mubr.msk.f32.vlgmr.msra.gmra.mrb[0].mxu1 %vm52_vm0, %v227_v53 }
 0x102   :  { %575 = vmatprep.mubr.f32.mxu1 %v2893_v62  ;;  %2693 = vmatpush1.bf16.msra.mxu1 %v2541_v8 }
 0x103   :  { %2692 = vmatprep.subr.bf16.mxu1 %v2543_v9 }
 0x106   :  { %2694 = vmatpush1.bf16.msra.mxu1 %v2545_v16 }
 0x107   :  { %2548 = vmatprep.subr.bf16.mxu1 %v3137_v17 }
 0x1d4   :  { %v2482_v19 = vpop.f32.mrb[0].mxu1 }
 0x1d5   :  { %v310_v20 = vmul.f32 0.125, %v2482_v19  ;;  %v300_v21 = vpop.f32.mrb[1].mxu1  ;;  %v3263_v19 = vpack.c.bf16 %v784_v15, %v782_v14 }
 0x1d6   :  { %v309_v22 = vmul.f32 0.125, %v300_v21 }
 0x1d7   :  { %v312_v23 = vadd.f32 1e-05, %v310_v20 }
 0x1d8   :  { %v311_v25 = vadd.f32 1e-05, %v309_v22 }
 0x1d9   :  { %2697 = vrsqrt.f32 %v312_v23 }
 0x1da   :  { %2699 = vrsqrt.f32 %v311_v25 }
 0x1e3   :  { %v3141_v27 = vpop.eup %2697 }
 0x1e4   :  { %v3148_v28 = vpop.eup %2699  ;;  %v326_v29 = vmul.f32 %v3141_v27, %v3075_v24  ;;  %v316_v24 = vmul.f32 %v3141_v27, %v3039_v0  ;;  %v774_v0 = vld [vmem:[%s4135_s5 + $0x20] sm:$0xff]  ;;  %v328_v44 = vmul.f32 %v3141_v27, %v3083_v31  ;;  %v318_v5 = vmul.f32 %v3141_v27, %v3041_v1 }
 0x1e5   :  { %v315_v34 = vmul.f32 %v3148_v28, %v3023_v56  ;;  %v327_v35 = vmul.f32 %v3148_v28, %v3051_v7  ;;  %v317_v43 = vmul.f32 %v3148_v28, %v3025_v57  ;;  %v3204_v31 = vpack.c.bf16 %v776_v38, %v774_v0  ;;  %v778_v57 = vld [vmem:[%s4135_s5 + $0x40] sm:$0xff] }
 0x1e6   :  { %v349_v36 = vmul.f32 %v3146_v26, %v326_v29  ;;  %v339_v47 = vmul.f32 %v3146_v26, %v316_v24  ;;  %v351_v51 = vmul.f32 %v3146_v26, %v328_v44  ;;  %v329_v53 = vmul.f32 %v3148_v28, %v3058_v12  ;;  %v385_v0 = vld [vmem:[%s4138_s6] sm:$0x3]  ;;  %s2894_s6 = smov 64  }
 0x1e7   :  { %v338_v56 = vmul.f32 %v3146_v26, %v315_v34  ;;  %v350_v7 = vmul.f32 %v3146_v26, %v327_v35  ;;  %v340_v63 = vmul.f32 %v3146_v26, %v317_v43  ;;  %v3234_v12 = vpack.c.bf16 %v780_v52, %v778_v57 }
 0x1e8   :  { %v372_v42 = vadd.f32 %v3161_v32, %v349_v36  ;;  %v362_v61 = vadd.f32 %v3161_v32, %v339_v47  ;;  %v374_v8 = vadd.f32 %v3161_v32, %v351_v51  ;;  %v352_v9 = vmul.f32 %v3146_v26, %v329_v53 }
 0x1e9   :  { %v361_v45 = vadd.f32 %v3161_v32, %v338_v56  ;;  %v373_v50 = vadd.f32 %v3161_v32, %v350_v7  ;;  %v330_v1 = vmul.f32 %v3141_v27, %v3089_v37  ;;  %v363_v10 = vadd.f32 %v3161_v32, %v340_v63 }
 0x1ea   :  { %2357 = vmatmul.mubr.msk.f32.vlgmr.msra.gmra.mrb[2].mxu1 %vm52_vm0, %v372_v42  ;;  %v341_v13 = vmul.f32 %v3146_v26, %v318_v5  ;;  %v319_v16 = vmul.f32 %v3148_v28, %v3027_v58  ;;  %v375_v37 = vadd.f32 %v3161_v32, %v352_v9  ;;  %v320_v22 = vmul.f32 %v3141_v27, %v3043_v2 }
 0x1eb   :  { %2550 = vmatpush1.bf16.msra.mxu1 %v3176_v41  ;;  %2346 = vmatmul.mubr.msk.f32.vlgmr.msra.gmra.mrb[2].mxu0 %vm52_vm0, %v361_v45  ;;  %v353_v58 = vmul.f32 %v3146_v26, %v330_v1  ;;  %v321_v29 = vmul.f32 %v3148_v28, %v3029_v59  ;;  %v322_v59 = vmul.f32 %v3141_v27, %v3056_v11 }
 0x1ec   :  { %581 = vmatprep.mubr.f32.mxu1 %v2893_v62  ;;  %515 = vmatprep.mubr.f32.mxu0 %v2893_v62  ;;  %v364_v20 = vadd.f32 %v3161_v32, %v341_v13  ;;  %v342_v21 = vmul.f32 %v3146_v26, %v319_v16  ;;  %v343_v2 = vmul.f32 %v3146_v26, %v320_v22 }
 0x1ed   :  { %2552 = vmatprep.subr.bf16.mxu1 %v3190_v46  ;;  %2614 = vmatpush1.bf16.msra.mxu0 %v3176_v41  ;;  %v376_v23 = vadd.f32 %v3161_v32, %v353_v58  ;;  %v344_v33 = vmul.f32 %v3146_v26, %v321_v29  ;;  %v345_v35 = vmul.f32 %v3146_v26, %v322_v59 }
 0x1ee   :  { %2358 = vmatmul.mubr.msk.f32.gmra.mrb[4].mxu1 %vm52_vm0, %v373_v50  ;;  %2616 = vmatprep.subr.bf16.mxu0 %v3190_v46  ;;  %v365_v25 = vadd.f32 %v3161_v32, %v342_v21  ;;  %v366_v30 = vadd.f32 %v3161_v32, %v343_v2  ;;  %v323_v11 = vmul.f32 %v3148_v28, %v3031_v60 }
 0x1ef   :  { %2347 = vmatmul.mubr.msk.f32.gmra.mrb[4].mxu0 %vm52_vm0, %v362_v61  ;;  %2554 = vmatpush1.bf16.msra.mxu1 %v3204_v31  ;;  %v367_v34 = vadd.f32 %v3161_v32, %v344_v33  ;;  %v368_v24 = vadd.f32 %v3161_v32, %v345_v35  ;;  %v324_v39 = vmul.f32 %v3141_v27, %v3067_v18 }
 0x1f0   :  { %587 = vmatprep.mubr.f32.mxu1 %v2893_v62  ;;  %521 = vmatprep.mubr.f32.mxu0 %v2893_v62  ;;  %v346_v36 = vmul.f32 %v3146_v26, %v323_v11  ;;  %v325_v56 = vmul.f32 %v3148_v28, %v3045_v3  ;;  %v387_v28 = vlaneseq }
 0x1f1   :  { %2556 = vmatprep.subr.bf16.mxu1 %v3227_v4  ;;  %2618 = vmatpush1.bf16.msra.mxu0 %v3204_v31  ;;  %v347_v40 = vmul.f32 %v3146_v26, %v324_v39 }
 0x1f2   :  { %2359 = vmatmul.mubr.msk.f32.gmra.mrb[6].mxu1 %vm52_vm0, %v374_v8  ;;  %2620 = vmatprep.subr.bf16.mxu0 %v3227_v4  ;;  %v369_v60 = vadd.f32 %v3161_v32, %v346_v36  ;;  %v348_v27 = vmul.f32 %v3146_v26, %v325_v56  ;;  %v388_v42 = vshrl.u32 %v387_v28, 7  ;;  %v3342_v45 = vand.u32 127, %v387_v28 }
 0x1f3   :  { %2348 = vmatmul.mubr.msk.f32.gmra.mrb[6].mxu0 %vm52_vm0, %v363_v10  ;;  %2558 = vmatpush1.bf16.msra.mxu1 %v3234_v12  ;;  %v370_v18 = vadd.f32 %v3161_v32, %v347_v40 }
 0x1f4   :  { %593 = vmatprep.mubr.f32.mxu1 %v2893_v62  ;;  %527 = vmatprep.mubr.f32.mxu0 %v2893_v62  ;;  %v371_v3 = vadd.f32 %v3161_v32, %v348_v27  ;;  %v389_v7 = vsub.s32 0, %v388_v42  ;;  %v393_v26 = vsub.s32 1, %v388_v42  ;;  %v640_v50 = vadd.s32 128, %v3342_v45 }
 0x1f5   :  { %2560 = vmatprep.subr.bf16.mxu1 %v3236_v6  ;;  %2622 = vmatpush1.bf16.msra.mxu0 %v3234_v12  ;;  %v645_v55 = vand.u32 63, %v3342_v45  ;;  %vm2015_vm4 = vcmp.lt.s32.totalorder %v3342_v45, 32 }
 0x1f6   :  { %2360 = vmatmul.mubr.msk.f32.gmra.mrb[8].mxu1 %vm52_vm0, %v375_v37  ;;  %2624 = vmatprep.subr.bf16.mxu0 %v3236_v6  ;;  %v3338_v38 = vrot.slane %v385_v0, %v389_v7  ;;  %v3340_v44 = vrot.slane %v385_v0, %v393_v26  ;;  %v652_v5 = vand.u32 63, %v640_v50 }
 0x1f7   :  { %2349 = vmatmul.mubr.msk.f32.gmra.mrb[8].mxu0 %vm52_vm0, %v364_v20  ;;  %599 = vmatprep.mubr.f32.mxu1 %v2893_v62  ;;  %vm3361_vm1 = vcmp.lt.s32.totalorder %v645_v55, 32 }
 0x1f8   :  { %2562 = vmatpush1.bf16.msra.mxu1 %v3263_v19  ;;  %533 = vmatprep.mubr.f32.mxu0 %v2893_v62  ;;  %vm3371_vm2 = vcmp.lt.s32.totalorder %v652_v5, 32 }
 0x1f9   :  { %2564 = vmatprep.subr.bf16.mxu1 %v3137_v17  ;;  %2626 = vmatpush1.bf16.msra.mxu0 %v3263_v19 }
 0x1fa   :  { %2361 = vmatmul.mubr.msk.f32.gmra.mrb[10].mxu1 %vm52_vm0, %v376_v23  ;;  %2644 = vmatprep.subr.bf16.mxu0 %v3137_v17 }
 0x1fb   :  { %2350 = vmatmul.mubr.msk.f32.gmra.mrb[10].mxu0 %vm52_vm0, %v365_v25  ;;  %858 = vmatprep.mubr.f32.mxu1 %v2893_v62 }
 0x1fc   :  { %539 = vmatprep.mubr.f32.mxu0 %v2893_v62 }
 0x1fe   :  { %859 = vmatmul.mubr.f32.vlgmr.msra.gmra.mrb[12].mxu1 %v2893_v62 }
 0x1ff   :  { %2351 = vmatmul.mubr.msk.f32.gmra.mrb[12].mxu0 %vm52_vm0, %v366_v30  ;;  %864 = vmatprep.mubr.f32.mxu1 %v2893_v62 }
 0x200   :  { %545 = vmatprep.mubr.f32.mxu0 %v2893_v62  ;;  %2566 = vmatpush1.bf16.msra.mxu1 %v3176_v41 }
 0x201   :  { %2568 = vmatprep.subr.bf16.mxu1 %v3190_v46 }
 0x202   :  { %865 = vmatmul.mubr.f32.gmra.mrb[14].mxu1 %v2893_v62 }
 0x203   :  { %2352 = vmatmul.mubr.msk.f32.gmra.mrb[14].mxu0 %vm52_vm0, %v367_v34  ;;  %1011 = vmatprep.mubr.f32.mxu1 %v2893_v62 }
 0x204   :  { %551 = vmatprep.mubr.f32.mxu0 %v2893_v62  ;;  %2570 = vmatpush1.bf16.msra.mxu1 %v3204_v31 }
 0x205   :  { %2572 = vmatprep.subr.bf16.mxu1 %v3227_v4 }
 0x207   :  { %2353 = vmatmul.mubr.msk.f32.gmra.mrb[16].mxu0 %vm52_vm0, %v368_v24 }
 0x208   :  { %557 = vmatprep.mubr.f32.mxu0 %v2893_v62  ;;  %2574 = vmatpush1.bf16.msra.mxu1 %v3234_v12 }
 0x209   :  { %2576 = vmatprep.subr.bf16.mxu1 %v3236_v6 }
 0x20b   :  { %2354 = vmatmul.mubr.msk.f32.gmra.mrb[18].mxu0 %vm52_vm0, %v369_v60 }
 0x20c   :  { %563 = vmatprep.mubr.f32.mxu0 %v2893_v62  ;;  %2578 = vmatpush1.bf16.msra.mxu1 %v3263_v19 }
 0x20d   :  { %2580 = vmatprep.subr.bf16.mxu1 %v3137_v17 }
 0x20f   :  { %2355 = vmatmul.mubr.msk.f32.gmra.mrb[20].mxu0 %vm52_vm0, %v370_v18 }
 0x210   :  { %569 = vmatprep.mubr.f32.mxu0 %v2893_v62 }
 0x213   :  { %2356 = vmatmul.mubr.msk.f32.gmra.mrb[22].mxu0 %vm52_vm0, %v371_v3 }
 0x214   :  { %1473 = vmatprep.mubr.f32.mxu0 %v2893_v62 }
 0x2bd   :  { %v577_v47 = vpop.f32.mrb[2].mxu1 }
 0x2be   :  { %v3345_v32 = vadd.f32 %v577_v47, %v3338_v38  ;;  %v511_v43 = vpop.f32.mrb[2].mxu0  ;;  %v579_v48 = vpop.f32.mrb[3].mxu1 }
 0x2bf   :  { %v3348_v49 = vadd.f32 %v579_v48, %v3340_v44  ;;  %v513_v57 = vpop.f32.mrb[3].mxu0  ;;  %v3387_v23 = vadd.f32 %v511_v43, %v3338_v38 }
 0x2c0   :  { %v3401_v59 = vadd.f32 %v513_v57, %v3340_v44 }
 0x2c1   :  { %v583_v51 = vpop.f32.mrb[4].mxu1 }
 0x2c2   :  { %v3352_v52 = vadd.f32 %v583_v51, %v3338_v38  ;;  %v517_v53 = vpop.f32.mrb[4].mxu0  ;;  %v585_v54 = vpop.f32.mrb[5].mxu1 }
 0x2c3   :  { %v3356_v61 = vadd.f32 %v585_v54, %v3340_v44  ;;  %v519_v63 = vpop.f32.mrb[5].mxu0  ;;  %v3437_v3 = vadd.f32 %v517_v53, %v3338_v38 }
 0x2c4   :  { %v3451_v47 = vadd.f32 %v519_v63, %v3340_v44 }
 0x2c5   :  { %v589_v8 = vpop.f32.mrb[6].mxu1 }
 0x2c6   :  { %v3359_v9 = vadd.f32 %v589_v8, %v3338_v38  ;;  %v523_v1 = vpop.f32.mrb[6].mxu0  ;;  %v591_v10 = vpop.f32.mrb[7].mxu1 }
 0x2c7   :  { %v3366_v14 = vadd.f32 %v523_v1, %v3338_v38  ;;  %v3369_v15 = vadd.f32 %v591_v10, %v3340_v44  ;;  %v525_v16 = vpop.f32.mrb[7].mxu0 }
 0x2c8   :  { %v3376_v58 = vadd.f32 %v525_v16, %v3340_v44 }
 0x2c9   :  { %v595_v20 = vpop.f32.mrb[8].mxu1  ;;  %v702_v21 = vsel %vm3361_vm1, %v3366_v14, %v3352_v52 }
 0x2ca   :  { %v3390_v25 = vadd.f32 %v595_v20, %v3338_v38  ;;  %v529_v2 = vpop.f32.mrb[8].mxu0  ;;  %v597_v29 = vpop.f32.mrb[9].mxu1  ;;  %v703_v30 = vsel %vm3371_vm2, %v3376_v58, %v3356_v61 }
 0x2cb   :  { %v3404_v34 = vadd.f32 %v529_v2, %v3338_v38  ;;  %v3407_v35 = vadd.f32 %v597_v29, %v3340_v44  ;;  %v531_v11 = vpop.f32.mrb[9].mxu0 }
 0x2cc   :  { %v3410_v24 = vadd.f32 %v531_v11, %v3340_v44  ;;  %v676_v36 = vsel %vm3361_vm1, %v3387_v23, %v3390_v25 }
 0x2cd   :  { %v601_v60 = vpop.f32.mrb[10].mxu1  ;;  %v677_v40 = vsel %vm3371_vm2, %v3401_v59, %v3407_v35  ;;  %v704_v56 = vsel %vm3361_vm1, %v3404_v34, %v3359_v9 }
 0x2ce   :  { %v3440_v28 = vadd.f32 %v601_v60, %v3338_v38  ;;  %v535_v42 = vpop.f32.mrb[10].mxu0  ;;  %v603_v7 = vpop.f32.mrb[11].mxu1 }
 0x2cf   :  { %v3454_v43 = vadd.f32 %v535_v42, %v3338_v38  ;;  %v3457_v48 = vadd.f32 %v603_v7, %v3340_v44  ;;  %v537_v57 = vpop.f32.mrb[11].mxu0 }
 0x2d0   :  { %v3460_v50 = vadd.f32 %v537_v57, %v3340_v44  ;;  %v678_v51 = vsel %vm3361_vm1, %v3437_v3, %v3440_v28 }
 0x2d1   :  { %v860_v54 = vpop.f32.mrb[12].mxu1  ;;  %v679_v55 = vsel %vm3371_vm2, %v3451_v47, %v3457_v48 }
 0x2d2   :  { %v871_v5 = vadd.f32 %v860_v54, %v676_v36  ;;  %v541_v8 = vpop.f32.mrb[12].mxu0  ;;  %v862_v1 = vpop.f32.mrb[13].mxu1 }
 0x2d3   :  { %v3479_v10 = vadd.f32 %v541_v8, %v3338_v38  ;;  %v3481_v16 = vadd.f32 %v862_v1, %v677_v40  ;;  %v543_v20 = vpop.f32.mrb[13].mxu0 }
 0x2d4   :  { %v3484_v2 = vadd.f32 %v543_v20, %v3340_v44 }
 0x2d5   :  { %2701 = vtanh.f32 %v3481_v16  ;;  %v866_v29 = vpop.f32.mrb[14].mxu1 }
 0x2d6   :  { %v873_v60 = vadd.f32 %v866_v29, %v678_v51  ;;  %v547_v40 = vpop.f32.mrb[14].mxu0  ;;  %v868_v42 = vpop.f32.mrb[15].mxu1 }
 0x2d7   :  { %v3504_v54 = vadd.f32 %v547_v40, %v3338_v38  ;;  %v3506_v8 = vadd.f32 %v868_v42, %v679_v55  ;;  %v549_v1 = vpop.f32.mrb[15].mxu0 }
 0x2d8   :  { %v3509_v51 = vadd.f32 %v549_v1, %v3340_v44 }
 0x2d9   :  { %2703 = vtanh.f32 %v3506_v8 }
 0x2da   :  { %v553_v20 = vpop.f32.mrb[16].mxu0 }
 0x2db   :  { %v3513_v29 = vadd.f32 %v553_v20, %v3338_v38  ;;  %v555_v63 = vpop.f32.mrb[17].mxu0 }
 0x2dc   :  { %v3516_v53 = vadd.f32 %v555_v63, %v3340_v44 }
 0x2de   :  { %v559_v27 = vpop.f32.mrb[18].mxu0 }
 0x2df   :  { %v2702_v39 = vpop.eup %2701  ;;  %v3519_v40 = vadd.f32 %v559_v27, %v3338_v38  ;;  %v561_v55 = vpop.f32.mrb[19].mxu0 }
 0x2e0   :  { %v3522_v42 = vadd.f32 %v561_v55, %v3340_v44  ;;  %905 = vrot.lane.b32.xlu0 %v2702_v39, %s2894_s6 }
 0x2e2   :  { %v565_v20 = vpop.f32.mrb[20].mxu0 }
 0x2e3   :  { %v2704_v55 = vpop.eup %2703  ;;  %v3542_v26 = vadd.f32 %v565_v20, %v3338_v38  ;;  %v567_v18 = vpop.f32.mrb[21].mxu0 }
 0x2e4   :  { %v3545_v33 = vadd.f32 %v567_v18, %v3340_v44  ;;  %907 = vrot.lane.b32.xlu0 %v2704_v55, %s2894_s6 }
 0x2e6   :  { %v571_v36 = vpop.f32.mrb[22].mxu0 }
 0x2e7   :  { %v3565_v55 = vadd.f32 %v571_v36, %v3338_v38  ;;  %v573_v39 = vpop.f32.mrb[23].mxu0  ;;  %v2362_v36 = vmul.f32 -1.442695, %v871_v5 }
 0x2e8   :  { %v3568_v63 = vadd.f32 %v573_v39, %v3340_v44  ;;  %v2364_v39 = vmul.f32 -1.442695, %v873_v60 }
 0x2e9   :  { %2705 = vpow2.f32 %v2362_v36 }
 0x2ea   :  { %v737_v44 = vsel %vm3371_vm2, %v3568_v63, %v3460_v50  ;;  %2707 = vpow2.f32 %v2364_v39 }
 0x2f3   :  { %v2706_v18 = vpop.eup %2705 }
 0x2f4   :  { %v887_v22 = vadd.f32 1.0, %v2706_v18  ;;  %v2708_v27 = vpop.eup %2707 }
 0x2f5   :  { %v889_v1 = vadd.f32 1.0, %v2708_v27 }
 0x2f6   :  { %2709 = vrcp.f32 %v887_v22 }
 0x2f7   :  { %2711 = vrcp.f32 %v889_v1 }
 0x300   :  { %v2710_v20 = vpop.eup %2709 }
 0x301   :  { %v2712_v38 = vpop.eup %2711  ;;  %v901_v5 = vmul.f32 0.0, %v2710_v20 }
 0x302   :  { %v902_v18 = vmul.f32 0.0, %v2712_v38 }
 0x352   :  { %v906_v7 = vpop.permute.xlu0 %905 }
 0x353   :  { %v911_v11 = vmul.f32 %v2710_v20, %v906_v7 }
 0x355   :  { %915 = vrot.lane.b32.xlu1 %v911_v11, %s2894_s6 }
 0x356   :  { %v908_v57 = vpop.permute.xlu0 %907 }
 0x357   :  { %v912_v0 = vmul.f32 %v2712_v38, %v908_v57  ;;  %v2365_v57 = vmul.f32 -1.442695, %v3506_v8 }
 0x359   :  { %917 = vrot.lane.b32.xlu1 %v912_v0, %s2894_s6  ;;  %v2363_v0 = vmul.f32 -1.442695, %v3481_v16 }
 0x3c7   :  { %v916_v36 = vpop.permute.xlu1 %915 }
 0x3c8   :  { %v3588_v60 = vadd.f32 %v916_v36, %v901_v5 }
 0x3ca   :  { %2713 = vtanh.f32 %v3588_v60 }
 0x3cb   :  { %v918_v22 = vpop.permute.xlu1 %917 }
 0x3cc   :  { %v3591_v27 = vadd.f32 %v918_v22, %v902_v18 }
 0x3ce   :  { %2715 = vtanh.f32 %v3591_v27 }
 0x3cf   :  { %2717 = vpow2.f32 %v2363_v0 }
 0x3d0   :  { %2719 = vpow2.f32 %v2365_v57 }
 0x3d4   :  { %v2714_v7 = vpop.eup %2713 }
 0x3d5   :  { %927 = vrot.lane.b32.xlu0 %v2714_v7, %s2894_s6 }
 0x3d8   :  { %v2716_v11 = vpop.eup %2715 }
 0x3d9   :  { %929 = vrot.lane.b32.xlu1 %v2716_v11, %s2894_s6  ;;  %v2718_v1 = vpop.eup %2717 }
 0x3da   :  { %v888_v20 = vadd.f32 1.0, %v2718_v1  ;;  %v2720_v38 = vpop.eup %2719 }
 0x3db   :  { %v890_v39 = vadd.f32 1.0, %v2720_v38 }
 0x3dc   :  { %2721 = vrcp.f32 %v888_v20 }
 0x3dd   :  { %2723 = vrcp.f32 %v890_v39 }
 0x3e6   :  { %v2722_v5 = vpop.eup %2721 }
 0x3e7   :  { %v2724_v22 = vpop.eup %2723 }
 0x447   :  { %v928_v36 = vpop.permute.xlu0 %927 }
 0x448   :  { %v933_v18 = vmul.f32 %v2722_v5, %v928_v36 }
 0x44a   :  { %935 = vst.msk [vmem:[#allocation3] sm:$0xff] %vm790_vm3, %v933_v18  ;;  %2366 = vmatmul.mubr.msk.f32.vlgmr.msra.gmra.mrb[16].mxu1 %vm790_vm3, %v933_v18 }
 0x44b   :  { %v930_v16 = vpop.permute.xlu1 %929  ;;  %1017 = vmatprep.mubr.f32.mxu1 %v2893_v62  ;;  %2582 = vmatpush1.bf16.msra.mxu1 %v3176_v41 }
 0x44c   :  { %v934_v8 = vmul.f32 %v2724_v22, %v930_v16  ;;  %2584 = vmatprep.subr.bf16.mxu1 %v3190_v46 }
 0x44e   :  { %936 = vst.msk [vmem:[#allocation3 + $0x8] sm:$0xff] %vm790_vm3, %v934_v8  ;;  %2367 = vmatmul.mubr.msk.f32.gmra.mrb[18].mxu1 %vm790_vm3, %v934_v8 }
 0x44f   :  { %2586 = vmatpush1.bf16.msra.mxu1 %v3204_v31  ;;  %1165 = vmatprep.mubr.f32.mxu1 %v2893_v62 }
 0x450   :  { %2588 = vmatprep.subr.bf16.mxu1 %v3227_v4 }
 0x453   :  { %2590 = vmatpush1.bf16.msra.mxu1 %v3234_v12 }
 0x454   :  { %2592 = vmatprep.subr.bf16.mxu1 %v3236_v6 }
 0x457   :  { %2594 = vmatpush1.bf16.msra.mxu1 %v3263_v19 }
 0x458   :  { %2596 = vmatprep.subr.bf16.mxu1 %v3137_v17 }
 0x51d   :  { %v1013_v7 = vpop.f32.mrb[16].mxu1 }
 0x51e   :  { %v1024_v11 = vadd.f32 %v1013_v7, %v702_v21  ;;  %v1015_v0 = vpop.f32.mrb[17].mxu1  ;;  %v4146_v21 = vsel %vm3371_vm2, %v3410_v24, %v3369_v15 }
 0x51f   :  { %v1025_v57 = vadd.f32 %v1015_v0, %v703_v30 }
 0x520   :  { %v2368_v36 = vmul.f32 -1.442695, %v1024_v11 }
 0x521   :  { %2725 = vtanh.f32 %v1025_v57  ;;  %v1019_v1 = vpop.f32.mrb[18].mxu1 }
 0x522   :  { %v1026_v20 = vadd.f32 %v1019_v1, %v704_v56  ;;  %v1021_v38 = vpop.f32.mrb[19].mxu1 }
 0x523   :  { %v1027_v39 = vadd.f32 %v1021_v38, %v4146_v21 }
 0x524   :  { %v2370_v18 = vmul.f32 -1.442695, %v1026_v20 }
 0x525   :  { %2727 = vtanh.f32 %v1027_v39 }
 0x526   :  { %2729 = vpow2.f32 %v2368_v36 }
 0x527   :  { %2731 = vpow2.f32 %v2370_v18 }
 0x52b   :  { %v2726_v5 = vpop.eup %2725 }
 0x52c   :  { %1058 = vrot.lane.b32.xlu0 %v2726_v5, %s2894_s6 }
 0x52f   :  { %v2728_v30 = vpop.eup %2727 }
 0x530   :  { %1060 = vrot.lane.b32.xlu1 %v2728_v30, %s2894_s6  ;;  %v2730_v22 = vpop.eup %2729 }
 0x531   :  { %v1040_v56 = vadd.f32 1.0, %v2730_v22  ;;  %v2732_v16 = vpop.eup %2731 }
 0x532   :  { %v1042_v8 = vadd.f32 1.0, %v2732_v16 }
 0x533   :  { %2733 = vrcp.f32 %v1040_v56 }
 0x534   :  { %2735 = vrcp.f32 %v1042_v8  ;;  %v2369_v8 = vmul.f32 -1.442695, %v1025_v57 }
 0x53d   :  { %v2734_v7 = vpop.eup %2733 }
 0x53e   :  { %v2736_v38 = vpop.eup %2735  ;;  %v1054_v11 = vmul.f32 %v2734_v7, %v3588_v60  ;;  %v2371_v60 = vmul.f32 -1.442695, %v1027_v39 }
 0x53f   :  { %v1055_v36 = vmul.f32 %v2736_v38, %v3591_v27 }
 0x59e   :  { %v1059_v0 = vpop.permute.xlu0 %1058 }
 0x59f   :  { %v1064_v1 = vmul.f32 %v2734_v7, %v1059_v0 }
 0x5a1   :  { %1068 = vrot.lane.b32.xlu0 %v1064_v1, %s2894_s6 }
 0x5a2   :  { %v1061_v21 = vpop.permute.xlu1 %1060 }
 0x5a3   :  { %v1065_v5 = vmul.f32 %v2736_v38, %v1061_v21 }
 0x5a5   :  { %1070 = vrot.lane.b32.xlu1 %v1065_v5, %s2894_s6 }
 0x613   :  { %v1069_v20 = vpop.permute.xlu0 %1068 }
 0x614   :  { %v3637_v30 = vadd.f32 %v1069_v20, %v1054_v11 }
 0x616   :  { %2737 = vtanh.f32 %v3637_v30 }
 0x617   :  { %v1071_v18 = vpop.permute.xlu1 %1070 }
 0x618   :  { %v3641_v22 = vadd.f32 %v1071_v18, %v1055_v36  ;;  %v4147_v36 = vsel %vm3361_vm1, %v3454_v43, %v3565_v55 }
 0x61a   :  { %2739 = vtanh.f32 %v3641_v22 }
 0x61b   :  { %2741 = vpow2.f32 %v2369_v8 }
 0x61c   :  { %2743 = vpow2.f32 %v2371_v60 }
 0x620   :  { %v2738_v56 = vpop.eup %2737 }
 0x621   :  { %1080 = vrot.lane.b32.xlu0 %v2738_v56, %s2894_s6 }
 0x624   :  { %v2740_v16 = vpop.eup %2739 }
 0x625   :  { %1082 = vrot.lane.b32.xlu1 %v2740_v16, %s2894_s6  ;;  %v2742_v7 = vpop.eup %2741  ;;  %v4148_v16 = vsel %vm3371_vm2, %v3460_v50, %v3568_v63 }
 0x626   :  { %v1041_v0 = vadd.f32 1.0, %v2742_v7  ;;  %v2744_v1 = vpop.eup %2743  ;;  %v4149_v7 = vsel %vm3361_vm1, %v3479_v10, %v3345_v32 }
 0x627   :  { %v1043_v27 = vadd.f32 1.0, %v2744_v1 }
 0x628   :  { %2745 = vrcp.f32 %v1041_v0 }
 0x629   :  { %2747 = vrcp.f32 %v1043_v27  ;;  %v4150_v27 = vsel %vm3371_vm2, %v3484_v2, %v3348_v49 }
 0x632   :  { %v2746_v38 = vpop.eup %2745 }
 0x633   :  { %v2748_v11 = vpop.eup %2747 }
 0x693   :  { %v1081_v21 = vpop.permute.xlu0 %1080 }
 0x694   :  { %v1086_v5 = vmul.f32 %v2746_v38, %v1081_v21 }
 0x696   :  { %1089 = vst.msk [vmem:[#allocation3 + $0x10] sm:$0xff] %vm790_vm3, %v1086_v5  ;;  %2372 = vmatmul.mubr.msk.f32.vlgmr.msra.gmra.mrb[20].mxu1 %vm790_vm3, %v1086_v5 }
 0x697   :  { %v1083_v20 = vpop.permute.xlu1 %1082  ;;  %1171 = vmatprep.mubr.f32.mxu1 %v2893_v62  ;;  %2598 = vmatpush1.bf16.msra.mxu1 %v3176_v41 }
 0x698   :  { %v1087_v57 = vmul.f32 %v2748_v11, %v1083_v20  ;;  %2600 = vmatprep.subr.bf16.mxu1 %v3190_v46 }
 0x69a   :  { %1090 = vst.msk [vmem:[#allocation3 + $0x18] sm:$0xff] %vm790_vm3, %v1087_v57  ;;  %2373 = vmatmul.mubr.msk.f32.gmra.mrb[22].mxu1 %vm790_vm3, %v1087_v57 }
 0x69b   :  { %2602 = vmatpush1.bf16.msra.mxu1 %v3204_v31  ;;  %1319 = vmatprep.mubr.f32.mxu1 %v2893_v62 }
 0x69c   :  { %2604 = vmatprep.subr.bf16.mxu1 %v3227_v4 }
 0x69f   :  { %2606 = vmatpush1.bf16.msra.mxu1 %v3234_v12 }
 0x6a0   :  { %2608 = vmatprep.subr.bf16.mxu1 %v3236_v6 }
 0x6a3   :  { %2610 = vmatpush1.bf16.msra.mxu1 %v3263_v19 }
 0x6a4   :  { %2628 = vmatprep.subr.bf16.mxu1 %v3137_v17 }
 0x769   :  { %v1167_v39 = vpop.f32.mrb[20].mxu1 }
 0x76a   :  { %v1178_v18 = vadd.f32 %v1167_v39, %v4147_v36  ;;  %v1169_v56 = vpop.f32.mrb[21].mxu1 }
 0x76b   :  { %v1179_v8 = vadd.f32 %v1169_v56, %v4148_v16 }
 0x76c   :  { %v2374_v11 = vmul.f32 -1.442695, %v1178_v18 }
 0x76d   :  { %2749 = vtanh.f32 %v1179_v8  ;;  %v1173_v60 = vpop.f32.mrb[22].mxu1 }
 0x76e   :  { %v1180_v0 = vadd.f32 %v1173_v60, %v4149_v7  ;;  %v1175_v1 = vpop.f32.mrb[23].mxu1 }
 0x76f   :  { %v1181_v38 = vadd.f32 %v1175_v1, %v4150_v27 }
 0x770   :  { %v2376_v20 = vmul.f32 -1.442695, %v1180_v0 }
 0x771   :  { %2751 = vtanh.f32 %v1181_v38 }
 0x772   :  { %2753 = vpow2.f32 %v2374_v11 }
 0x773   :  { %2755 = vpow2.f32 %v2376_v20 }
 0x777   :  { %v2750_v21 = vpop.eup %2749 }
 0x778   :  { %1212 = vrot.lane.b32.xlu0 %v2750_v21, %s2894_s6 }
 0x77b   :  { %v2752_v5 = vpop.eup %2751 }
 0x77c   :  { %1214 = vrot.lane.b32.xlu1 %v2752_v5, %s2894_s6  ;;  %v2754_v57 = vpop.eup %2753 }
 0x77d   :  { %v1194_v39 = vadd.f32 1.0, %v2754_v57  ;;  %v2756_v36 = vpop.eup %2755 }
 0x77e   :  { %v1196_v56 = vadd.f32 1.0, %v2756_v36 }
 0x77f   :  { %2757 = vrcp.f32 %v1194_v39 }
 0x780   :  { %2759 = vrcp.f32 %v1196_v56  ;;  %v2375_v56 = vmul.f32 -1.442695, %v1179_v8 }
 0x789   :  { %v2758_v16 = vpop.eup %2757 }
 0x78a   :  { %v2760_v1 = vpop.eup %2759  ;;  %v1208_v18 = vmul.f32 %v2758_v16, %v3637_v30  ;;  %v2377_v30 = vmul.f32 -1.442695, %v1181_v38 }
 0x78b   :  { %v1209_v11 = vmul.f32 %v2760_v1, %v3641_v22 }
 0x7ea   :  { %v1213_v60 = vpop.permute.xlu0 %1212 }
 0x7eb   :  { %v1218_v7 = vmul.f32 %v2758_v16, %v1213_v60 }
 0x7ed   :  { %1222 = vrot.lane.b32.xlu0 %v1218_v7, %s2894_s6 }
 0x7ee   :  { %v1215_v27 = vpop.permute.xlu1 %1214 }
 0x7ef   :  { %v1219_v21 = vmul.f32 %v2760_v1, %v1215_v27 }
 0x7f1   :  { %1224 = vrot.lane.b32.xlu1 %v1219_v21, %s2894_s6 }
 0x85f   :  { %v1223_v0 = vpop.permute.xlu0 %1222 }
 0x860   :  { %v3685_v5 = vadd.f32 %v1223_v0, %v1208_v18 }
 0x862   :  { %2761 = vtanh.f32 %v3685_v5 }
 0x863   :  { %v1225_v20 = vpop.permute.xlu1 %1224 }
 0x864   :  { %v3689_v57 = vadd.f32 %v1225_v20, %v1209_v11  ;;  %v4151_v11 = vsel %vm3361_vm1, %v3504_v54, %v3519_v40 }
 0x866   :  { %2763 = vtanh.f32 %v3689_v57 }
 0x867   :  { %2765 = vpow2.f32 %v2375_v56 }
 0x868   :  { %2767 = vpow2.f32 %v2377_v30 }
 0x86c   :  { %v2762_v39 = vpop.eup %2761 }
 0x86d   :  { %1234 = vrot.lane.b32.xlu0 %v2762_v39, %s2894_s6 }
 0x870   :  { %v2764_v36 = vpop.eup %2763 }
 0x871   :  { %1236 = vrot.lane.b32.xlu1 %v2764_v36, %s2894_s6  ;;  %v2766_v16 = vpop.eup %2765  ;;  %v4152_v36 = vsel %vm3371_vm2, %v3509_v51, %v3522_v42 }
 0x872   :  { %v1195_v60 = vadd.f32 1.0, %v2766_v16  ;;  %v2768_v7 = vpop.eup %2767 }
 0x873   :  { %v1197_v22 = vadd.f32 1.0, %v2768_v7  ;;  %v4154_v7 = vsel %vm3371_vm2, %v3516_v53, %v3545_v33 }
 0x874   :  { %2769 = vrcp.f32 %v1195_v60 }
 0x875   :  { %2771 = vrcp.f32 %v1197_v22 }
 0x87e   :  { %v2770_v1 = vpop.eup %2769 }
 0x87f   :  { %v2772_v18 = vpop.eup %2771 }
 0x8df   :  { %v1235_v27 = vpop.permute.xlu0 %1234 }
 0x8e0   :  { %v1240_v21 = vmul.f32 %v2770_v1, %v1235_v27 }
 0x8e2   :  { %1243 = vst.msk [vmem:[#allocation3 + $0x20] sm:$0xff] %vm790_vm3, %v1240_v21  ;;  %2378 = vmatmul.mubr.msk.f32.vlgmr.msra.gmra.mrb[24].mxu1 %vm790_vm3, %v1240_v21 }
 0x8e3   :  { %v1237_v0 = vpop.permute.xlu1 %1236  ;;  %1325 = vmatprep.mubr.f32.mxu1 %v2893_v62  ;;  %2630 = vmatpush1.bf16.msra.mxu1 %v3176_v41 }
 0x8e4   :  { %v1241_v8 = vmul.f32 %v2772_v18, %v1237_v0  ;;  %2632 = vmatprep.subr.bf16.mxu1 %v3190_v46 }
 0x8e6   :  { %1244 = vst.msk [vmem:[#allocation3 + $0x28] sm:$0xff] %vm790_vm3, %v1241_v8  ;;  %2379 = vmatmul.mubr.msk.f32.gmra.mrb[26].mxu1 %vm790_vm3, %v1241_v8 }
 0x8e7   :  { %2634 = vmatpush1.bf16.msra.mxu1 %v3204_v31  ;;  %1627 = vmatprep.mubr.f32.mxu1 %v2893_v62 }
 0x8e8   :  { %2636 = vmatprep.subr.bf16.mxu1 %v3227_v4 }
 0x8eb   :  { %2638 = vmatpush1.bf16.msra.mxu1 %v3234_v12 }
 0x8ec   :  { %2640 = vmatprep.subr.bf16.mxu1 %v3236_v6 }
 0x8ef   :  { %2642 = vmatpush1.bf16.msra.mxu1 %v3263_v19 }
 0x8f0   :  { %2660 = vmatprep.subr.bf16.mxu1 %v3137_v17  ;;  %v4153_v17 = vsel %vm3361_vm1, %v3513_v29, %v3542_v26 }
 0x9b5   :  { %v1321_v38 = vpop.f32.mrb[24].mxu1 }
 0x9b6   :  { %v1332_v20 = vadd.f32 %v1321_v38, %v4151_v11  ;;  %v1323_v39 = vpop.f32.mrb[25].mxu1 }
 0x9b7   :  { %v1333_v56 = vadd.f32 %v1323_v39, %v4152_v36 }
 0x9b8   :  { %v2380_v21 = vmul.f32 -1.442695, %v1332_v20 }
 0x9b9   :  { %2773 = vtanh.f32 %v1333_v56  ;;  %v1327_v30 = vpop.f32.mrb[26].mxu1 }
 0x9ba   :  { %v1334_v16 = vadd.f32 %v1327_v30, %v4153_v17  ;;  %v1329_v60 = vpop.f32.mrb[27].mxu1 }
 0x9bb   :  { %v1335_v22 = vadd.f32 %v1329_v60, %v4154_v7 }
 0x9bc   :  { %v2382_v18 = vmul.f32 -1.442695, %v1334_v16 }
 0x9bd   :  { %2775 = vtanh.f32 %v1335_v22 }
 0x9be   :  { %2777 = vpow2.f32 %v2380_v21 }
 0x9bf   :  { %2779 = vpow2.f32 %v2382_v18 }
 0x9c3   :  { %v2774_v1 = vpop.eup %2773 }
 0x9c4   :  { %1366 = vrot.lane.b32.xlu0 %v2774_v1, %s2894_s6 }
 0x9c7   :  { %v2776_v27 = vpop.eup %2775 }
 0x9c8   :  { %1368 = vrot.lane.b32.xlu1 %v2776_v27, %s2894_s6  ;;  %v2778_v0 = vpop.eup %2777 }
 0x9c9   :  { %v1348_v8 = vadd.f32 1.0, %v2778_v0  ;;  %v2780_v38 = vpop.eup %2779 }
 0x9ca   :  { %v1350_v11 = vadd.f32 1.0, %v2780_v38  ;;  %v2381_v38 = vmul.f32 -1.442695, %v1333_v56 }
 0x9cb   :  { %2781 = vrcp.f32 %v1348_v8 }
 0x9cc   :  { %2783 = vrcp.f32 %v1350_v11 }
 0x9d5   :  { %v2782_v39 = vpop.eup %2781 }
 0x9d6   :  { %v2784_v17 = vpop.eup %2783  ;;  %v1362_v20 = vmul.f32 %v2782_v39, %v3685_v5  ;;  %v2383_v5 = vmul.f32 -1.442695, %v1335_v22 }
 0x9d7   :  { %v1363_v27 = vmul.f32 %v2784_v17, %v3689_v57 }
 0xa36   :  { %v1367_v36 = vpop.permute.xlu0 %1366 }
 0xa37   :  { %v1372_v30 = vmul.f32 %v2782_v39, %v1367_v36 }
 0xa39   :  { %1376 = vrot.lane.b32.xlu0 %v1372_v30, %s2894_s6 }
 0xa3a   :  { %v1369_v60 = vpop.permute.xlu1 %1368 }
 0xa3b   :  { %v1373_v7 = vmul.f32 %v2784_v17, %v1369_v60 }
 0xa3d   :  { %1378 = vrot.lane.b32.xlu1 %v1373_v7, %s2894_s6 }
 0xaab   :  { %v1377_v16 = vpop.permute.xlu0 %1376 }
 0xaac   :  { %v3733_v1 = vadd.f32 %v1377_v16, %v1362_v20  ;;  %v4155_v16 = vsel %vm3361_vm1, %v3519_v40, %v3504_v54  ;;  %v4158_v54 = vsel %vm3371_vm2, %v3545_v33, %v3516_v53 }
 0xaae   :  { %2785 = vtanh.f32 %v3733_v1 }
 0xaaf   :  { %v1379_v21 = vpop.permute.xlu1 %1378 }
 0xab0   :  { %v3737_v18 = vadd.f32 %v1379_v21, %v1363_v27 }
 0xab2   :  { %2787 = vtanh.f32 %v3737_v18 }
 0xab3   :  { %2789 = vpow2.f32 %v2381_v38 }
 0xab4   :  { %2791 = vpow2.f32 %v2383_v5  ;;  %v4157_v5 = vsel %vm3361_vm1, %v3542_v26, %v3513_v29 }
 0xab8   :  { %v2786_v0 = vpop.eup %2785 }
 0xab9   :  { %1388 = vrot.lane.b32.xlu0 %v2786_v0, %s2894_s6  ;;  %v4156_v0 = vsel %vm3371_vm2, %v3522_v42, %v3509_v51 }
 0xabc   :  { %v2788_v8 = vpop.eup %2787 }
 0xabd   :  { %1390 = vrot.lane.b32.xlu1 %v2788_v8, %s2894_s6  ;;  %v2790_v11 = vpop.eup %2789 }
 0xabe   :  { %v1349_v39 = vadd.f32 1.0, %v2790_v11  ;;  %v2792_v36 = vpop.eup %2791 }
 0xabf   :  { %v1351_v57 = vadd.f32 1.0, %v2792_v36 }
 0xac0   :  { %2793 = vrcp.f32 %v1349_v39 }
 0xac1   :  { %2795 = vrcp.f32 %v1351_v57 }
 0xaca   :  { %v2794_v30 = vpop.eup %2793 }
 0xacb   :  { %v2796_v7 = vpop.eup %2795 }
 0xb2b   :  { %v1389_v17 = vpop.permute.xlu0 %1388 }
 0xb2c   :  { %v1394_v60 = vmul.f32 %v2794_v30, %v1389_v17 }
 0xb2e   :  { %1397 = vst.msk [vmem:[#allocation3 + $0x30] sm:$0xff] %vm790_vm3, %v1394_v60  ;;  %2384 = vmatmul.mubr.msk.f32.vlgmr.msra.gmra.mrb[24].mxu0 %vm790_vm3, %v1394_v60 }
 0xb2f   :  { %v1391_v20 = vpop.permute.xlu1 %1390  ;;  %1479 = vmatprep.mubr.f32.mxu0 %v2893_v62  ;;  %2646 = vmatpush1.bf16.msra.mxu0 %v3176_v41 }
 0xb30   :  { %v1395_v56 = vmul.f32 %v2796_v7, %v1391_v20  ;;  %2648 = vmatprep.subr.bf16.mxu0 %v3190_v46 }
 0xb32   :  { %1398 = vst.msk [vmem:[#allocation3 + $0x38] sm:$0xff] %vm790_vm3, %v1395_v56  ;;  %2385 = vmatmul.mubr.msk.f32.gmra.mrb[26].mxu0 %vm790_vm3, %v1395_v56 }
 0xb33   :  { %2650 = vmatpush1.bf16.msra.mxu0 %v3204_v31  ;;  %1781 = vmatprep.mubr.f32.mxu0 %v2893_v62 }
 0xb34   :  { %2652 = vmatprep.subr.bf16.mxu0 %v3227_v4 }
 0xb37   :  { %2654 = vmatpush1.bf16.msra.mxu0 %v3234_v12 }
 0xb38   :  { %2656 = vmatprep.subr.bf16.mxu0 %v3236_v6 }
 0xb3b   :  { %2658 = vmatpush1.bf16.msra.mxu0 %v3263_v19 }
 0xc01   :  { %v1475_v22 = vpop.f32.mrb[24].mxu0 }
 0xc02   :  { %v1486_v27 = vadd.f32 %v1475_v22, %v4155_v16  ;;  %v1477_v21 = vpop.f32.mrb[25].mxu0 }
 0xc03   :  { %v1487_v8 = vadd.f32 %v1477_v21, %v4156_v0 }
 0xc04   :  { %v2386_v42 = vmul.f32 -1.442695, %v1486_v27 }
 0xc05   :  { %2797 = vtanh.f32 %v1487_v8  ;;  %v1481_v38 = vpop.f32.mrb[26].mxu0 }
 0xc06   :  { %v1488_v11 = vadd.f32 %v1481_v38, %v4157_v5  ;;  %v1483_v39 = vpop.f32.mrb[27].mxu0 }
 0xc07   :  { %v1489_v40 = vadd.f32 %v1483_v39, %v4158_v54  ;;  %v2387_v39 = vmul.f32 -1.442695, %v1487_v8 }
 0xc08   :  { %v2388_v57 = vmul.f32 -1.442695, %v1488_v11 }
 0xc09   :  { %2799 = vtanh.f32 %v1489_v40 }
 0xc0a   :  { %2801 = vpow2.f32 %v2386_v42 }
 0xc0b   :  { %2803 = vpow2.f32 %v2388_v57 }
 0xc0f   :  { %v2798_v36 = vpop.eup %2797 }
 0xc10   :  { %1520 = vrot.lane.b32.xlu0 %v2798_v36, %s2894_s6 }
 0xc13   :  { %v2800_v51 = vpop.eup %2799 }
 0xc14   :  { %1522 = vrot.lane.b32.xlu1 %v2800_v51, %s2894_s6  ;;  %v2802_v26 = vpop.eup %2801 }
 0xc15   :  { %v1502_v29 = vadd.f32 1.0, %v2802_v26  ;;  %v2804_v30 = vpop.eup %2803 }
 0xc16   :  { %v1504_v17 = vadd.f32 1.0, %v2804_v30 }
 0xc17   :  { %2805 = vrcp.f32 %v1502_v29 }
 0xc18   :  { %2807 = vrcp.f32 %v1504_v17 }
 0xc21   :  { %v2806_v60 = vpop.eup %2805 }
 0xc22   :  { %v2808_v7 = vpop.eup %2807  ;;  %v1516_v22 = vmul.f32 %v2806_v60, %v3733_v1  ;;  %v2389_v1 = vmul.f32 -1.442695, %v1489_v40  ;;  %v2052_v40 = vld [vmem:[#allocation3 + $0x30] sm:$0xff] }
 0xc23   :  { %v1517_v21 = vmul.f32 %v2808_v7, %v3737_v18 }
 0xc82   :  { %v1521_v33 = vpop.permute.xlu0 %1520 }
 0xc83   :  { %v1526_v53 = vmul.f32 %v2806_v60, %v1521_v33 }
 0xc85   :  { %1530 = vrot.lane.b32.xlu0 %v1526_v53, %s2894_s6 }
 0xc86   :  { %v1523_v20 = vpop.permute.xlu1 %1522 }
 0xc87   :  { %v1527_v56 = vmul.f32 %v2808_v7, %v1523_v20 }
 0xc89   :  { %1532 = vrot.lane.b32.xlu1 %v1527_v56, %s2894_s6 }
 0xcf7   :  { %v1531_v16 = vpop.permute.xlu0 %1530 }
 0xcf8   :  { %v3780_v27 = vadd.f32 %v1531_v16, %v1516_v22 }
 0xcfa   :  { %2809 = vtanh.f32 %v3780_v27 }
 0xcfb   :  { %v1533_v0 = vpop.permute.xlu1 %1532 }
 0xcfc   :  { %v3784_v38 = vadd.f32 %v1533_v0, %v1517_v21 }
 0xcfe   :  { %2811 = vtanh.f32 %v3784_v38 }
 0xcff   :  { %2813 = vpow2.f32 %v2387_v39 }
 0xd00   :  { %2815 = vpow2.f32 %v2389_v1 }
 0xd04   :  { %v2810_v5 = vpop.eup %2809 }
 0xd05   :  { %1542 = vrot.lane.b32.xlu0 %v2810_v5, %s2894_s6 }
 0xd08   :  { %v2812_v11 = vpop.eup %2811 }
 0xd09   :  { %1544 = vrot.lane.b32.xlu1 %v2812_v11, %s2894_s6  ;;  %v2814_v54 = vpop.eup %2813 }
 0xd0a   :  { %v1503_v36 = vadd.f32 1.0, %v2814_v54  ;;  %v2816_v51 = vpop.eup %2815 }
 0xd0b   :  { %v1505_v18 = vadd.f32 1.0, %v2816_v51 }
 0xd0c   :  { %2817 = vrcp.f32 %v1503_v36 }
 0xd0d   :  { %2819 = vrcp.f32 %v1505_v18 }
 0xd16   :  { %v2818_v42 = vpop.eup %2817 }
 0xd17   :  { %v2820_v29 = vpop.eup %2819 }
 0xd77   :  { %v1543_v57 = vpop.permute.xlu0 %1542 }
 0xd78   :  { %v1548_v26 = vmul.f32 %v2818_v42, %v1543_v57 }
 0xd7a   :  { %1551 = vst.msk [vmem:[#allocation3 + $0x40] sm:$0xff] %vm790_vm3, %v1548_v26  ;;  %2390 = vmatmul.mubr.msk.f32.vlgmr.msra.gmra.mrb[28].mxu1 %vm790_vm3, %v1548_v26 }
 0xd7b   :  { %v1545_v30 = vpop.permute.xlu1 %1544  ;;  %1633 = vmatprep.mubr.f32.mxu1 %v2893_v62  ;;  %2662 = vmatpush1.bf16.msra.mxu1 %v3176_v41 }
 0xd7c   :  { %v1549_v8 = vmul.f32 %v2820_v29, %v1545_v30  ;;  %2664 = vmatprep.subr.bf16.mxu1 %v3190_v46 }
 0xd7e   :  { %1552 = vst.msk [vmem:[#allocation3 + $0x48] sm:$0xff] %vm790_vm3, %v1549_v8  ;;  %2391 = vmatmul.mubr.msk.f32.gmra.mrb[30].mxu1 %vm790_vm3, %v1549_v8 }
 0xd7f   :  { %2666 = vmatpush1.bf16.msra.mxu1 %v3204_v31  ;;  %1935 = vmatprep.mubr.f32.mxu1 %v2893_v62  ;;  %v2053_v31 = vld [vmem:[#allocation3 + $0x38] sm:$0xff] }
 0xd80   :  { %2668 = vmatprep.subr.bf16.mxu1 %v3227_v4 }
 0xd81   :  { %v2054_v17 = vld [vmem:[#allocation3 + $0x40] sm:$0xff] }
 0xd82   :  { %v2056_v41 = vsel %vm2015_vm4, %v2052_v40, %v2054_v17  ;;  %v2060_v46 = vsel %vm2015_vm4, %v2054_v17, %v2052_v40 }
 0xd83   :  { %2058 = vst.msk [vmem:[#allocation3 + $0x30] sm:$0xff] %vm790_vm3, %v2056_v41  ;;  %2062 = vst.msk [vmem:[#allocation3 + $0x40] sm:$0xff] %vm790_vm3, %v2060_v46  ;;  %2670 = vmatpush1.bf16.msra.mxu1 %v3234_v12  ;;  %v4159_v12 = vsel %vm3361_vm1, %v3565_v55, %v3454_v43  ;;  %v4161_v43 = vsel %vm3371_vm2, %v3348_v49, %v3484_v2 }
 0xd84   :  { %2672 = vmatprep.subr.bf16.mxu1 %v3236_v6 }
 0xd85   :  { %v2055_v60 = vld [vmem:[#allocation3 + $0x48] sm:$0xff] }
 0xd86   :  { %v2057_v4 = vsel %vm2015_vm4, %v2053_v31, %v2055_v60  ;;  %v2061_v33 = vsel %vm2015_vm4, %v2055_v60, %v2053_v31 }
 0xd87   :  { %2059 = vst.msk [vmem:[#allocation3 + $0x38] sm:$0xff] %vm790_vm3, %v2057_v4  ;;  %2063 = vst.msk [vmem:[#allocation3 + $0x48] sm:$0xff] %vm790_vm3, %v2061_v33  ;;  %2674 = vmatpush1.bf16.msra.mxu1 %v3263_v19  ;;  %v4160_v19 = vsel %vm3361_vm1, %v3345_v32, %v3479_v10 }
 0xe4d   :  { %v1629_v53 = vpop.f32.mrb[28].mxu1 }
 0xe4e   :  { %v1640_v6 = vadd.f32 %v1629_v53, %v4159_v12  ;;  %v1631_v7 = vpop.f32.mrb[29].mxu1  ;;  %v2040_v12 = vld [vmem:[#allocation3 + $0x20] sm:$0xff] }
 0xe4f   :  { %v1641_v20 = vadd.f32 %v1631_v7, %v737_v44 }
 0xe50   :  { %v2392_v63 = vmul.f32 -1.442695, %v1640_v6 }
 0xe51   :  { %2821 = vtanh.f32 %v1641_v20  ;;  %v1635_v56 = vpop.f32.mrb[30].mxu1  ;;  %v2393_v8 = vmul.f32 -1.442695, %v1641_v20 }
 0xe52   :  { %v1642_v22 = vadd.f32 %v1635_v56, %v4160_v19  ;;  %v1637_v16 = vpop.f32.mrb[31].mxu1  ;;  %v2041_v56 = vld [vmem:[#allocation3 + $0x28] sm:$0xff] }
 0xe53   :  { %v1643_v55 = vadd.f32 %v1637_v16, %v4161_v43 }
 0xe54   :  { %v2394_v44 = vmul.f32 -1.442695, %v1642_v22 }
 0xe55   :  { %2823 = vtanh.f32 %v1643_v55 }
 0xe56   :  { %2825 = vpow2.f32 %v2392_v63  ;;  %v4163_v63 = vsel %vm3371_vm2, %v3356_v61, %v3376_v58 }
 0xe57   :  { %2827 = vpow2.f32 %v2394_v44 }
 0xe5b   :  { %v2822_v21 = vpop.eup %2821 }
 0xe5c   :  { %1674 = vrot.lane.b32.xlu0 %v2822_v21, %s2894_s6 }
 0xe5f   :  { %v2824_v50 = vpop.eup %2823 }
 0xe60   :  { %1676 = vrot.lane.b32.xlu1 %v2824_v50, %s2894_s6  ;;  %v2826_v32 = vpop.eup %2825 }
 0xe61   :  { %v1656_v10 = vadd.f32 1.0, %v2826_v32  ;;  %v2828_v0 = vpop.eup %2827 }
 0xe62   :  { %v1658_v5 = vadd.f32 1.0, %v2828_v0 }
 0xe63   :  { %2829 = vrcp.f32 %v1656_v10  ;;  %v4164_v10 = vsel %vm3361_vm1, %v3359_v9, %v3404_v34 }
 0xe64   :  { %2831 = vrcp.f32 %v1658_v5 }
 0xe6d   :  { %v2830_v11 = vpop.eup %2829 }
 0xe6e   :  { %v2832_v39 = vpop.eup %2831  ;;  %v1670_v36 = vmul.f32 %v2830_v11, %v3780_v27  ;;  %v2395_v27 = vmul.f32 -1.442695, %v1643_v55  ;;  %v4162_v55 = vsel %vm3361_vm1, %v3352_v52, %v3366_v14  ;;  %v4165_v52 = vsel %vm3371_vm2, %v3369_v15, %v3410_v24 }
 0xe6f   :  { %v1671_v42 = vmul.f32 %v2832_v39, %v3784_v38 }
 0xece   :  { %v1675_v49 = vpop.permute.xlu0 %1674 }
 0xecf   :  { %v1680_v2 = vmul.f32 %v2830_v11, %v1675_v49 }
 0xed1   :  { %1684 = vrot.lane.b32.xlu0 %v1680_v2, %s2894_s6 }
 0xed2   :  { %v1677_v1 = vpop.permute.xlu1 %1676 }
 0xed3   :  { %v1681_v54 = vmul.f32 %v2832_v39, %v1677_v1 }
 0xed5   :  { %1686 = vrot.lane.b32.xlu1 %v1681_v54, %s2894_s6 }
 0xf43   :  { %v1685_v51 = vpop.permute.xlu0 %1684 }
 0xf44   :  { %v3840_v18 = vadd.f32 %v1685_v51, %v1670_v36 }
 0xf46   :  { %2833 = vtanh.f32 %v3840_v18 }
 0xf47   :  { %v1687_v57 = vpop.permute.xlu1 %1686 }
 0xf48   :  { %v3844_v26 = vadd.f32 %v1687_v57, %v1671_v42 }
 0xf4a   :  { %2835 = vtanh.f32 %v3844_v26 }
 0xf4b   :  { %2837 = vpow2.f32 %v2393_v8 }
 0xf4c   :  { %2839 = vpow2.f32 %v2395_v27 }
 0xf50   :  { %v2834_v29 = vpop.eup %2833 }
 0xf51   :  { %1696 = vrot.lane.b32.xlu0 %v2834_v29, %s2894_s6 }
 0xf54   :  { %v2836_v30 = vpop.eup %2835 }
 0xf55   :  { %1698 = vrot.lane.b32.xlu1 %v2836_v30, %s2894_s6  ;;  %v2838_v40 = vpop.eup %2837 }
 0xf56   :  { %v1657_v17 = vadd.f32 1.0, %v2838_v40  ;;  %v2840_v41 = vpop.eup %2839 }
 0xf57   :  { %v1659_v38 = vadd.f32 1.0, %v2840_v41 }
 0xf58   :  { %2841 = vrcp.f32 %v1657_v17 }
 0xf59   :  { %2843 = vrcp.f32 %v1659_v38 }
 0xf62   :  { %v2842_v46 = vpop.eup %2841 }
 0xf63   :  { %v2844_v4 = vpop.eup %2843 }
 0xfc3   :  { %v1697_v31 = vpop.permute.xlu0 %1696 }
 0xfc4   :  { %v1702_v60 = vmul.f32 %v2842_v46, %v1697_v31 }
 0xfc6   :  { %1705 = vst.msk [vmem:[#allocation3 + $0x50] sm:$0xff] %vm790_vm3, %v1702_v60  ;;  %2396 = vmatmul.mubr.msk.f32.vlgmr.msra.gmra.mrb[28].mxu0 %vm790_vm3, %v1702_v60 }
 0xfc7   :  { %v1699_v33 = vpop.permute.xlu1 %1698  ;;  %1787 = vmatprep.mubr.f32.mxu0 %v2893_v62 }
 0xfc8   :  { %v1703_v53 = vmul.f32 %v2844_v4, %v1699_v33 }
 0xfca   :  { %1706 = vst.msk [vmem:[#allocation3 + $0x58] sm:$0xff] %vm790_vm3, %v1703_v53  ;;  %2397 = vmatmul.mubr.msk.f32.gmra.mrb[30].mxu0 %vm790_vm3, %v1703_v53 }
 0xfcd   :  { %v2042_v6 = vld [vmem:[#allocation3 + $0x50] sm:$0xff] }
 0xfce   :  { %v2044_v7 = vsel %vm2015_vm4, %v2040_v12, %v2042_v6  ;;  %v2048_v20 = vsel %vm2015_vm4, %v2042_v6, %v2040_v12 }
 0xfcf   :  { %2046 = vst.msk [vmem:[#allocation3 + $0x20] sm:$0xff] %vm790_vm3, %v2044_v7  ;;  %2050 = vst.msk [vmem:[#allocation3 + $0x50] sm:$0xff] %vm790_vm3, %v2048_v20  ;;  %v2028_v7 = vld [vmem:[#allocation3 + $0x10] sm:$0xff] }
 0xfd1   :  { %v2043_v19 = vld [vmem:[#allocation3 + $0x58] sm:$0xff] }
 0xfd2   :  { %v2045_v22 = vsel %vm2015_vm4, %v2041_v56, %v2043_v19  ;;  %v2049_v16 = vsel %vm2015_vm4, %v2043_v19, %v2041_v56 }
 0xfd3   :  { %2047 = vst.msk [vmem:[#allocation3 + $0x28] sm:$0xff] %vm790_vm3, %v2045_v22  ;;  %2051 = vst.msk [vmem:[#allocation3 + $0x58] sm:$0xff] %vm790_vm3, %v2049_v16  ;;  %v2029_v22 = vld [vmem:[#allocation3 + $0x18] sm:$0xff] }
 0xfda   :  { %v2069_v45 = vld [vmem:[#allocation3 + $0x28] sm:$0xff] }
0x1099   :  { %v1783_v43 = vpop.f32.mrb[28].mxu0 }
0x109a   :  { %v1794_v21 = vadd.f32 %v1783_v43, %v4162_v55  ;;  %v1785_v50 = vpop.f32.mrb[29].mxu0 }
0x109b   :  { %v1795_v44 = vadd.f32 %v1785_v50, %v4163_v63 }
0x109c   :  { %v2398_v58 = vmul.f32 -1.442695, %v1794_v21  ;;  %v4166_v21 = vsel %vm3361_vm1, %v3390_v25, %v3387_v23  ;;  %v4169_v23 = vsel %vm3371_vm2, %v3457_v48, %v3451_v47 }
0x109d   :  { %2845 = vtanh.f32 %v1795_v44  ;;  %v1789_v32 = vpop.f32.mrb[30].mxu0  ;;  %v2399_v41 = vmul.f32 -1.442695, %v1795_v44  ;;  %v4167_v44 = vsel %vm3371_vm2, %v3407_v35, %v3401_v59 }
0x109e   :  { %v1796_v0 = vadd.f32 %v1789_v32, %v4164_v10  ;;  %v1791_v5 = vpop.f32.mrb[31].mxu0 }
0x109f   :  { %v1797_v14 = vadd.f32 %v1791_v5, %v4165_v52 }
0x10a0   :  { %v2400_v49 = vmul.f32 -1.442695, %v1796_v0  ;;  %v4168_v0 = vsel %vm3361_vm1, %v3440_v28, %v3437_v3 }
0x10a1   :  { %2847 = vtanh.f32 %v1797_v14 }
0x10a2   :  { %2849 = vpow2.f32 %v2398_v58 }
0x10a3   :  { %2851 = vpow2.f32 %v2400_v49 }
0x10a7   :  { %v2846_v11 = vpop.eup %2845 }
0x10a8   :  { %1828 = vrot.lane.b32.xlu0 %v2846_v11, %s2894_s6 }
0x10ab   :  { %v2848_v61 = vpop.eup %2847 }
0x10ac   :  { %1830 = vrot.lane.b32.xlu1 %v2848_v61, %s2894_s6  ;;  %v2850_v9 = vpop.eup %2849 }
0x10ad   :  { %v1810_v34 = vadd.f32 1.0, %v2850_v9  ;;  %v2852_v2 = vpop.eup %2851 }
0x10ae   :  { %v1812_v39 = vadd.f32 1.0, %v2852_v2 }
0x10af   :  { %2853 = vrcp.f32 %v1810_v34 }
0x10b0   :  { %2855 = vrcp.f32 %v1812_v39 }
0x10b9   :  { %v2854_v1 = vpop.eup %2853 }
0x10ba   :  { %v2856_v54 = vpop.eup %2855  ;;  %v1824_v42 = vmul.f32 %v2854_v1, %v3840_v18  ;;  %v2401_v18 = vmul.f32 -1.442695, %v1797_v14 }
0x10bb   :  { %v1825_v30 = vmul.f32 %v2856_v54, %v3844_v26 }
0x111a   :  { %v1829_v15 = vpop.permute.xlu0 %1828 }
0x111b   :  { %v1834_v24 = vmul.f32 %v2854_v1, %v1829_v15 }
0x111d   :  { %1838 = vrot.lane.b32.xlu0 %v1834_v24, %s2894_s6 }
0x111e   :  { %v1831_v36 = vpop.permute.xlu1 %1830 }
0x111f   :  { %v1835_v51 = vmul.f32 %v2856_v54, %v1831_v36  ;;  %v2080_v36 = vld [vmem:[%s4139_s7] sm:$0xff] }
0x1121   :  { %1840 = vrot.lane.b32.xlu1 %v1835_v51, %s2894_s6  ;;  %v2081_v51 = vld [vmem:[%s4139_s7 + $0x8] sm:$0xff] }
0x118f   :  { %v1839_v57 = vpop.permute.xlu0 %1838 }
0x1190   :  { %v3891_v29 = vadd.f32 %v1839_v57, %v1824_v42  ;;  %v2675_v42 = vpack.c.bf16 %v2081_v51, %v2080_v36  ;;  %v2082_v57 = vld [vmem:[%s4139_s7 + $0x10] sm:$0xff] }
0x1192   :  { %2857 = vtanh.f32 %v3891_v29  ;;  %2676 = vmatprep.subr.bf16.mxu0 %v2675_v42 }
0x1193   :  { %v1841_v8 = vpop.permute.xlu1 %1840  ;;  %2678 = vmatpush3.bf16.msra.mxu0 %v2675_v42 }
0x1194   :  { %v3895_v27 = vadd.f32 %v1841_v8, %v1825_v30  ;;  %v2084_v30 = vld [vmem:[%s4139_s7 + $0x20] sm:$0xff] }
0x1196   :  { %2859 = vtanh.f32 %v3895_v27 }
0x1197   :  { %2861 = vpow2.f32 %v2399_v41  ;;  %v2086_v41 = vld [vmem:[%s4139_s7 + $0x30] sm:$0xff] }
0x1198   :  { %2863 = vpow2.f32 %v2401_v18  ;;  %v2087_v18 = vld [vmem:[%s4139_s7 + $0x38] sm:$0xff] }
0x119c   :  { %v2858_v40 = vpop.eup %2857 }
0x119d   :  { %1850 = vrot.lane.b32.xlu0 %v2858_v40, %s2894_s6  ;;  %v2085_v40 = vld [vmem:[%s4139_s7 + $0x28] sm:$0xff] }
0x11a0   :  { %v2860_v17 = vpop.eup %2859 }
0x11a1   :  { %1852 = vrot.lane.b32.xlu1 %v2860_v17, %s2894_s6  ;;  %v2862_v38 = vpop.eup %2861  ;;  %v2683_v17 = vpack.c.bf16 %v2085_v40, %v2084_v30 }
0x11a2   :  { %v1811_v46 = vadd.f32 1.0, %v2862_v38  ;;  %v2864_v31 = vpop.eup %2863  ;;  %v2687_v38 = vpack.c.bf16 %v2087_v18, %v2086_v41  ;;  %v2295_v18 = vld [vmem:[%s4133_s0 + $0x38] sm:$0xff] }
0x11a3   :  { %v1813_v26 = vadd.f32 1.0, %v2864_v31 }
0x11a4   :  { %2865 = vrcp.f32 %v1811_v46 }
0x11a5   :  { %2867 = vrcp.f32 %v1813_v26 }
0x11ae   :  { %v2866_v60 = vpop.eup %2865 }
0x11af   :  { %v2868_v53 = vpop.eup %2867 }
0x120f   :  { %v1851_v4 = vpop.permute.xlu0 %1850 }
0x1210   :  { %v1856_v33 = vmul.f32 %v2866_v60, %v1851_v4 }
0x1212   :  { %1859 = vst.msk [vmem:[#allocation3 + $0x60] sm:$0xff] %vm790_vm3, %v1856_v33  ;;  %2402 = vmatmul.mubr.msk.f32.vlgmr.msra.gmra.mrb[32].mxu1 %vm790_vm3, %v1856_v33 }
0x1213   :  { %v1853_v12 = vpop.permute.xlu1 %1852  ;;  %1941 = vmatprep.mubr.f32.mxu1 %v2893_v62 }
0x1214   :  { %v1857_v6 = vmul.f32 %v2868_v53, %v1853_v12 }
0x1216   :  { %1860 = vst.msk [vmem:[#allocation3 + $0x68] sm:$0xff] %vm790_vm3, %v1857_v6  ;;  %2403 = vmatmul.mubr.msk.f32.gmra.mrb[34].mxu1 %vm790_vm3, %v1857_v6 }
0x1219   :  { %v2030_v20 = vld [vmem:[#allocation3 + $0x60] sm:$0xff] }
0x121a   :  { %v2032_v56 = vsel %vm2015_vm4, %v2028_v7, %v2030_v20  ;;  %v2036_v19 = vsel %vm2015_vm4, %v2030_v20, %v2028_v7 }
0x121b   :  { %2034 = vst.msk [vmem:[#allocation3 + $0x10] sm:$0xff] %vm790_vm3, %v2032_v56  ;;  %2038 = vst.msk [vmem:[#allocation3 + $0x60] sm:$0xff] %vm790_vm3, %v2036_v19  ;;  %v2016_v19 = vld [vmem:[#allocation3] sm:$0xff] }
0x121d   :  { %v2031_v16 = vld [vmem:[#allocation3 + $0x68] sm:$0xff] }
0x121e   :  { %v2033_v62 = vsel %vm2015_vm4, %v2029_v22, %v2031_v16  ;;  %v2037_v43 = vsel %vm2015_vm4, %v2031_v16, %v2029_v22 }
0x121f   :  { %2035 = vst.msk [vmem:[#allocation3 + $0x18] sm:$0xff] %vm790_vm3, %v2033_v62  ;;  %2039 = vst.msk [vmem:[#allocation3 + $0x68] sm:$0xff] %vm790_vm3, %v2037_v43  ;;  %v2017_v43 = vld [vmem:[#allocation3 + $0x8] sm:$0xff] }
0x12e5   :  { %v1937_v55 = vpop.f32.mrb[32].mxu1 }
0x12e6   :  { %v1948_v50 = vadd.f32 %v1937_v55, %v4166_v21  ;;  %v1939_v63 = vpop.f32.mrb[33].mxu1 }
0x12e7   :  { %v1949_v32 = vadd.f32 %v1939_v63, %v4167_v44 }
0x12e8   :  { %v2404_v35 = vmul.f32 -1.442695, %v1948_v50 }
0x12e9   :  { %2869 = vtanh.f32 %v1949_v32  ;;  %v1943_v10 = vpop.f32.mrb[34].mxu1  ;;  %v2405_v46 = vmul.f32 -1.442695, %v1949_v32  ;;  %v2066_v32 = vld [vmem:[#allocation3 + $0x10] sm:$0xff] }
0x12ea   :  { %v1950_v5 = vadd.f32 %v1943_v10, %v4168_v0  ;;  %v1945_v52 = vpop.f32.mrb[35].mxu1  ;;  %v2067_v10 = vld [vmem:[#allocation3 + $0x18] sm:$0xff]  ;;  %v2068_v0 = vld [vmem:[#allocation3 + $0x20] sm:$0xff] }
0x12eb   :  { %v1951_v25 = vadd.f32 %v1945_v52, %v4169_v23  ;;  %v2071_v52 = vld [vmem:[#allocation3 + $0x38] sm:$0xff]  ;;  %v2072_v23 = vld [vmem:[#allocation3 + $0x40] sm:$0xff] }
0x12ec   :  { %v2406_v13 = vmul.f32 -1.442695, %v1950_v5  ;;  %v2070_v5 = vld [vmem:[#allocation3 + $0x30] sm:$0xff] }
0x12ed   :  { %2871 = vtanh.f32 %v1951_v25  ;;  %v2407_v31 = vmul.f32 -1.442695, %v1951_v25  ;;  %v2073_v25 = vld [vmem:[#allocation3 + $0x48] sm:$0xff] }
0x12ee   :  { %2873 = vpow2.f32 %v2404_v35  ;;  %v2076_v35 = vld [vmem:[#allocation3 + $0x60] sm:$0xff] }
0x12ef   :  { %2875 = vpow2.f32 %v2406_v13  ;;  %v2077_v13 = vld [vmem:[#allocation3 + $0x68] sm:$0xff] }
0x12f3   :  { %v2870_v14 = vpop.eup %2869 }
0x12f4   :  { %1982 = vrot.lane.b32.xlu0 %v2870_v14, %s2894_s6  ;;  %v2074_v14 = vld [vmem:[#allocation3 + $0x50] sm:$0xff] }
0x12f7   :  { %v2872_v59 = vpop.eup %2871 }
0x12f8   :  { %1984 = vrot.lane.b32.xlu1 %v2872_v59, %s2894_s6  ;;  %v2874_v3 = vpop.eup %2873  ;;  %v2075_v59 = vld [vmem:[#allocation3 + $0x58] sm:$0xff] }
0x12f9   :  { %v1964_v28 = vadd.f32 1.0, %v2874_v3  ;;  %v2876_v11 = vpop.eup %2875 }
0x12fa   :  { %v1966_v37 = vadd.f32 1.0, %v2876_v11  ;;  %v4002_v11 = vld [vmem:[%s4140_s8] ss:$0 sm:$0xff] }
0x12fb   :  { %2877 = vrcp.f32 %v1964_v28 }
0x12fc   :  { %2879 = vrcp.f32 %v1966_v37 }
0x1305   :  { %v2878_v61 = vpop.eup %2877 }
0x1306   :  { %v2880_v58 = vpop.eup %2879  ;;  %v1978_v34 = vmul.f32 %v2878_v61, %v3891_v29  ;;  %v2083_v29 = vld [vmem:[%s4139_s7 + $0x18] sm:$0xff] }
0x1307   :  { %v1979_v1 = vmul.f32 %v2880_v58, %v3895_v27  ;;  %v2679_v27 = vpack.c.bf16 %v2083_v29, %v2082_v57  ;;  %v2293_v57 = vld [vmem:[%s4133_s0 + $0x28] sm:$0xff] }
0x1309   :  { %2680 = vmatprep.subr.bf16.mxu0 %v2679_v27 }
0x130a   :  { %2682 = vmatpush3.bf16.msra.mxu0 %v2679_v27 }
0x130b   :  { %2684 = vmatprep.subr.bf16.mxu0 %v2683_v17 }
0x130e   :  { %2686 = vmatpush3.bf16.msra.mxu0 %v2683_v17 }
0x130f   :  { %2688 = vmatprep.subr.bf16.mxu0 %v2687_v38 }
0x1312   :  { %2690 = vmatpush3.bf16.msra.mxu0 %v2687_v38 }
0x1366   :  { %v1983_v47 = vpop.permute.xlu0 %1982 }
0x1367   :  { %v1988_v48 = vmul.f32 %v2878_v61, %v1983_v47  ;;  %v2289_v61 = vld [vmem:[%s4133_s0 + $0x8] sm:$0xff] }
0x1369   :  { %1992 = vrot.lane.b32.xlu0 %v1988_v48, %s2894_s6 }
0x136a   :  { %v1985_v49 = vpop.permute.xlu1 %1984 }
0x136b   :  { %v1989_v9 = vmul.f32 %v2880_v58, %v1985_v49  ;;  %v2288_v58 = vld [vmem:[%s4133_s0] sm:$0xff] }
0x136d   :  { %1994 = vrot.lane.b32.xlu1 %v1989_v9, %s2894_s6 }
0x13db   :  { %v1993_v2 = vpop.permute.xlu0 %1992 }
0x13dc   :  { %v1998_v39 = vadd.f32 %v1993_v2, %v1978_v34 }
0x13de   :  { %2881 = vtanh.f32 %v1998_v39  ;;  %v2291_v39 = vld [vmem:[%s4133_s0 + $0x18] sm:$0xff] }
0x13df   :  { %v1995_v15 = vpop.permute.xlu1 %1994 }
0x13e0   :  { %v1999_v24 = vadd.f32 %v1995_v15, %v1979_v1 }
0x13e2   :  { %2883 = vtanh.f32 %v1999_v24  ;;  %v2290_v24 = vld [vmem:[%s4133_s0 + $0x10] sm:$0xff] }
0x13e3   :  { %2885 = vpow2.f32 %v2405_v46 }
0x13e4   :  { %2887 = vpow2.f32 %v2407_v31  ;;  %v2294_v31 = vld [vmem:[%s4133_s0 + $0x30] sm:$0xff] }
0x13e8   :  { %v2882_v54 = vpop.eup %2881 }
0x13e9   :  { %2004 = vrot.lane.b32.xlu0 %v2882_v54, %s2894_s6 }
0x13ec   :  { %v2884_v8 = vpop.eup %2883 }
0x13ed   :  { %2006 = vrot.lane.b32.xlu1 %v2884_v8, %s2894_s6  ;;  %v2886_v26 = vpop.eup %2885  ;;  %v2292_v8 = vld [vmem:[%s4133_s0 + $0x20] sm:$0xff] }
0x13ee   :  { %v1965_v60 = vadd.f32 1.0, %v2886_v26  ;;  %v2888_v4 = vpop.eup %2887 }
0x13ef   :  { %v1967_v33 = vadd.f32 1.0, %v2888_v4 }
0x13f0   :  { %2889 = vrcp.f32 %v1965_v60 }
0x13f1   :  { %2891 = vrcp.f32 %v1967_v33 }
0x13fa   :  { %v2890_v53 = vpop.eup %2889 }
0x13fb   :  { %v2892_v7 = vpop.eup %2891 }
0x145b   :  { %v2005_v12 = vpop.permute.xlu0 %2004 }
0x145c   :  { %v2010_v6 = vmul.f32 %v2890_v53, %v2005_v12  ;;  %v2297_v53 = vld [vmem:[%s4133_s0 + $0x48] sm:$0xff] }
0x145e   :  { %2013 = vst.msk [vmem:[#allocation3 + $0x70] sm:$0xff] %vm790_vm3, %v2010_v6 }
0x145f   :  { %v2007_v20 = vpop.permute.xlu1 %2006 }
0x1460   :  { %v2011_v56 = vmul.f32 %v2892_v7, %v2007_v20  ;;  %v2296_v7 = vld [vmem:[%s4133_s0 + $0x40] sm:$0xff] }
0x1462   :  { %2014 = vst.msk [vmem:[#allocation3 + $0x78] sm:$0xff] %vm790_vm3, %v2011_v56 }
0x1465   :  { %v2018_v22 = vld [vmem:[#allocation3 + $0x70] sm:$0xff] }
0x1466   :  { %v2020_v16 = vsel %vm2015_vm4, %v2016_v19, %v2018_v22  ;;  %v2024_v62 = vsel %vm2015_vm4, %v2018_v22, %v2016_v19 }
0x1467   :  { %2022 = vst.msk [vmem:[#allocation3] sm:$0xff] %vm790_vm3, %v2020_v16  ;;  %2026 = vst.msk [vmem:[#allocation3 + $0x70] sm:$0xff] %vm790_vm3, %v2024_v62  ;;  %v2299_v16 = vld [vmem:[%s4133_s0 + $0x58] sm:$0xff] }
0x1469   :  { %v2019_v55 = vld [vmem:[#allocation3 + $0x78] sm:$0xff] }
0x146a   :  { %v2021_v21 = vsel %vm2015_vm4, %v2017_v43, %v2019_v55  ;;  %v2025_v50 = vsel %vm2015_vm4, %v2019_v55, %v2017_v43  ;;  %v2298_v55 = vld [vmem:[%s4133_s0 + $0x50] sm:$0xff] }
0x146b   :  { %2023 = vst.msk [vmem:[#allocation3 + $0x8] sm:$0xff] %vm790_vm3, %v2021_v21  ;;  %2027 = vst.msk [vmem:[#allocation3 + $0x78] sm:$0xff] %vm790_vm3, %v2025_v50 }
0x146e   :  { %v2064_v63 = vld [vmem:[#allocation3] sm:$0xff]  ;;  %v2078_v3 = vld [vmem:[#allocation3 + $0x70] sm:$0xff] }
0x146f   :  { %2499 = vmatprep.mubr.msk.f32.mxu0 %vm790_vm3, %v2064_v63 }
0x1472   :  { %v2065_v44 = vld [vmem:[#allocation3 + $0x8] sm:$0xff]  ;;  %v2079_v28 = vld [vmem:[#allocation3 + $0x78] sm:$0xff] }
0x1473   :  { %2500 = vmatmul.mubr.msk.f32.vlgmr.msra.gmra.mrb[32].mxu0 %vm790_vm3, %v2065_v44 }
0x1474   :  { %2502 = vmatprep.mubr.msk.f32.mxu0 %vm790_vm3, %v2066_v32  ;;  %v2301_v32 = vld [vmem:[%s4133_s0 + $0x68] sm:$0xff] }
0x1477   :  { %2503 = vmatmul.mubr.msk.f32.gmra.mrb[34].mxu0 %vm790_vm3, %v2067_v10 }
0x1478   :  { %2505 = vmatprep.mubr.msk.f32.mxu0 %vm790_vm3, %v2068_v0 }
0x147b   :  { %2506 = vmatmul.mubr.msk.f32.gmra.mrb[36].mxu0 %vm790_vm3, %v2069_v45  ;;  %v2300_v45 = vld [vmem:[%s4133_s0 + $0x60] sm:$0xff] }
0x147c   :  { %2508 = vmatprep.mubr.msk.f32.mxu0 %vm790_vm3, %v2070_v5 }
0x147f   :  { %2509 = vmatmul.mubr.msk.f32.gmra.mrb[38].mxu0 %vm790_vm3, %v2071_v52 }
0x1480   :  { %2511 = vmatprep.mubr.msk.f32.mxu0 %vm790_vm3, %v2072_v23 }
0x1483   :  { %2512 = vmatmul.mubr.msk.f32.gmra.mrb[40].mxu0 %vm790_vm3, %v2073_v25 }
0x1484   :  { %2514 = vmatprep.mubr.msk.f32.mxu0 %vm790_vm3, %v2074_v14  ;;  %v2303_v14 = vld [vmem:[%s4133_s0 + $0x78] sm:$0xff] }
0x1487   :  { %2515 = vmatmul.mubr.msk.f32.gmra.mrb[42].mxu0 %vm790_vm3, %v2075_v59 }
0x1488   :  { %2517 = vmatprep.mubr.msk.f32.mxu0 %vm790_vm3, %v2076_v35 }
0x148b   :  { %2518 = vmatmul.mubr.msk.f32.gmra.mrb[44].mxu0 %vm790_vm3, %v2077_v13  ;;  %v2302_v13 = vld [vmem:[%s4133_s0 + $0x70] sm:$0xff] }
0x148c   :  { %2520 = vmatprep.mubr.msk.f32.mxu0 %vm790_vm3, %v2078_v3 }
0x148f   :  { %2521 = vmatmul.mubr.msk.f32.gmra.mrb[46].mxu0 %vm790_vm3, %v2079_v28 }
0x1546   :  { %v2501_v37 = vpop.f32.mrb[32].mxu0 }
0x1547   :  { %v2215_v47 = vadd.f32 %v2501_v37, %v4002_v11  ;;  %v2209_v48 = vpop.f32.mrb[33].mxu0 }
0x1548   :  { %v2210_v49 = vadd.f32 %v4002_v11, %v2209_v48 }
0x1549   :  { %v2305_v9 = vadd.f32 %v2289_v61, %v2215_v47 }
0x154a   :  { %v2304_v34 = vadd.f32 %v2288_v58, %v2210_v49  ;;  %v2504_v2 = vpop.f32.mrb[34].mxu0 }
0x154b   :  { %2321 = vst.msk [vmem:[%s4141_s9 + $0x8] sm:$0xff] %vm52_vm0, %v2305_v9  ;;  %v2225_v1 = vadd.f32 %v2504_v2, %v4002_v11  ;;  %v2219_v15 = vpop.f32.mrb[35].mxu0 }
0x154c   :  { %2320 = vst.msk [vmem:[%s4141_s9] sm:$0xff] %vm52_vm0, %v2304_v34  ;;  %v2220_v54 = vadd.f32 %v4002_v11, %v2219_v15 }
0x154d   :  { %v2307_v36 = vadd.f32 %v2291_v39, %v2225_v1 }
0x154e   :  { %v2306_v51 = vadd.f32 %v2290_v24, %v2220_v54  ;;  %v2507_v42 = vpop.f32.mrb[36].mxu0 }
0x154f   :  { %2323 = vst.msk [vmem:[%s4141_s9 + $0x18] sm:$0xff] %vm52_vm0, %v2307_v36  ;;  %v2235_v29 = vadd.f32 %v2507_v42, %v4002_v11  ;;  %v2229_v30 = vpop.f32.mrb[37].mxu0 }
0x1550   :  { %2322 = vst.msk [vmem:[%s4141_s9 + $0x10] sm:$0xff] %vm52_vm0, %v2306_v51  ;;  %v2230_v27 = vadd.f32 %v4002_v11, %v2229_v30 }
0x1551   :  { %v2309_v40 = vadd.f32 %v2293_v57, %v2235_v29 }
0x1552   :  { %v2308_v17 = vadd.f32 %v2292_v8, %v2230_v27  ;;  %v2510_v41 = vpop.f32.mrb[38].mxu0 }
0x1553   :  { %2325 = vst.msk [vmem:[%s4141_s9 + $0x28] sm:$0xff] %vm52_vm0, %v2309_v40  ;;  %v2245_v38 = vadd.f32 %v2510_v41, %v4002_v11  ;;  %v2239_v46 = vpop.f32.mrb[39].mxu0 }
0x1554   :  { %2324 = vst.msk [vmem:[%s4141_s9 + $0x20] sm:$0xff] %vm52_vm0, %v2308_v17  ;;  %v2240_v26 = vadd.f32 %v4002_v11, %v2239_v46 }
0x1555   :  { %v2311_v60 = vadd.f32 %v2295_v18, %v2245_v38 }
0x1556   :  { %v2310_v4 = vadd.f32 %v2294_v31, %v2240_v26  ;;  %v2513_v33 = vpop.f32.mrb[40].mxu0 }
0x1557   :  { %2327 = vst.msk [vmem:[%s4141_s9 + $0x38] sm:$0xff] %vm52_vm0, %v2311_v60  ;;  %v2255_v12 = vadd.f32 %v2513_v33, %v4002_v11  ;;  %v2249_v6 = vpop.f32.mrb[41].mxu0 }
0x1558   :  { %2326 = vst.msk [vmem:[%s4141_s9 + $0x30] sm:$0xff] %vm52_vm0, %v2310_v4  ;;  %v2250_v20 = vadd.f32 %v4002_v11, %v2249_v6 }
0x1559   :  { %v2313_v56 = vadd.f32 %v2297_v53, %v2255_v12 }
0x155a   :  { %v2312_v19 = vadd.f32 %v2296_v7, %v2250_v20  ;;  %v2516_v22 = vpop.f32.mrb[42].mxu0 }
0x155b   :  { %2329 = vst.msk [vmem:[%s4141_s9 + $0x48] sm:$0xff] %vm52_vm0, %v2313_v56  ;;  %v2265_v62 = vadd.f32 %v2516_v22, %v4002_v11  ;;  %v2259_v43 = vpop.f32.mrb[43].mxu0 }
0x155c   :  { %2328 = vst.msk [vmem:[%s4141_s9 + $0x40] sm:$0xff] %vm52_vm0, %v2312_v19  ;;  %v2260_v21 = vadd.f32 %v4002_v11, %v2259_v43 }
0x155d   :  { %v2315_v50 = vadd.f32 %v2299_v16, %v2265_v62 }
0x155e   :  { %v2314_v63 = vadd.f32 %v2298_v55, %v2260_v21  ;;  %v2519_v44 = vpop.f32.mrb[44].mxu0 }
0x155f   :  { %2331 = vst.msk [vmem:[%s4141_s9 + $0x58] sm:$0xff] %vm52_vm0, %v2315_v50  ;;  %v2275_v10 = vadd.f32 %v2519_v44, %v4002_v11  ;;  %v2269_v0 = vpop.f32.mrb[45].mxu0 }
0x1560   :  { %2330 = vst.msk [vmem:[%s4141_s9 + $0x50] sm:$0xff] %vm52_vm0, %v2314_v63  ;;  %v2270_v5 = vadd.f32 %v4002_v11, %v2269_v0 }
0x1561   :  { %v2317_v52 = vadd.f32 %v2301_v32, %v2275_v10 }
0x1562   :  { %v2316_v23 = vadd.f32 %v2300_v45, %v2270_v5  ;;  %v2522_v25 = vpop.f32.mrb[46].mxu0 }
0x1563   :  { %2333 = vst.msk [vmem:[%s4141_s9 + $0x68] sm:$0xff] %vm52_vm0, %v2317_v52  ;;  %v2285_v59 = vadd.f32 %v2522_v25, %v4002_v11  ;;  %v2279_v35 = vpop.f32.mrb[47].mxu0 }
0x1564   :  { %2332 = vst.msk [vmem:[%s4141_s9 + $0x60] sm:$0xff] %vm52_vm0, %v2316_v23  ;;  %v2280_v3 = vadd.f32 %v4002_v11, %v2279_v35 }
0x1565   :  { %v2319_v28 = vadd.f32 %v2303_v14, %v2285_v59 }
0x1566   :  { %v2318_v37 = vadd.f32 %v2302_v13, %v2280_v3 }
0x1567   :  { %2335 = vst.msk [vmem:[%s4141_s9 + $0x78] sm:$0xff] %vm52_vm0, %v2319_v28 }
0x1568   :  { %2334 = vst.msk [vmem:[%s4141_s9 + $0x70] sm:$0xff] %vm52_vm0, %v2318_v37 }

</bundles_post_ra>
